<compile_context>
chip_gen: v7x
topology: tpu7x:2x2x1
jax: 0.10.0
libtpu: 0.0.40
codegen_flags: <defaults>
</compile_context>

<pallas_src>
import functools

import jax
import jax.numpy as jnp
from jax import lax
from jax.experimental import pallas as pl
from jax.experimental.pallas import tpu as pltpu

KSIZE = 7   # SpatialAttention kernel size
KPAD = 3    # SpatialAttention padding
DPAD = 1    # ExpandMask padding (dilate_stride == 1 -> no conv_transpose step)
PAD0 = 8    # sublane-aligned row offset of the interior inside the halo scratch


def _spatial_mask_kernel(w_ref, x_ref, out_ref, pad_ref, *, H, W, TB, GB):
    """One grid step processes GB lane-packed groups of TB images each.

    w_ref  : SMEM (2*7*7,) f32        maskconv weight flattened as (c, ky, kx)
    x_ref  : VMEM (GB, C, H, L) f32   L = TB*W lanes (TB images side by side)
    out_ref: VMEM (GB, 3, H, L) f32   [soft, hard, dilated] in the same packing
    pad_ref: VMEM (2, PAD0+H+KPAD, L) f32  row-halo scratch (halo rows zeroed)
    """
    L = TB * W

    # Halo rows stay zero for the whole step (only interior rows are ever
    # rewritten below); zeroing them costs ~6 vreg stores -> negligible, and
    # keeps the kernel correct under megacore grid sharding.
    zero_halo = jnp.zeros((KPAD, L), jnp.float32)
    for c in range(2):
        pad_ref[c, PAD0 - KPAD:PAD0, :] = zero_halo
        pad_ref[c, PAD0 + H:PAD0 + H + KPAD, :] = zero_halo

    # Per-image lane-validity masks for every |dx| <= KPAD, hoisted once per
    # grid step and shared between the 7x7 conv and the 3x3 dilation.
    col = lax.broadcasted_iota(jnp.int32, (H, L), 1) % W
    valid = {dx: (col + dx >= 0) & (col + dx < W)
             for dx in range(-KPAD, KPAD + 1) if dx != 0}

    def lane_shift(a, dx):
        """a[:, l] <- a[:, l + dx] with per-image zero padding (dx static)."""
        if dx == 0:
            return a
        rolled = pltpu.roll(a, (-dx) % L, axis=1)          # XLU lane rotate
        return jnp.where(valid[dx], rolled, 0.0)

    # Hoist the 98 scalar weight loads out of the per-group loop.
    w = [[[w_ref[c * KSIZE * KSIZE + i * KSIZE + j] for j in range(KSIZE)]
          for i in range(KSIZE)] for c in range(2)]

    for g in range(GB):
        x = x_ref[g].astype(jnp.float32)                   # (C, H, L)

        # ---- channel pooling (avg / max over C) -----------------------------
        avg = jnp.mean(x, axis=0)                          # (H, L)
        mx = jnp.max(x, axis=0)                            # (H, L)

        # ---- write pooled maps into the zero-halo scratch --------------------
        # Rows [PAD0-KPAD, PAD0) and [PAD0+H, PAD0+H+KPAD) stay zero, so
        # pad_ref[c, PAD0+dy : PAD0+dy+H, :] is a row-shifted, zero-padded view.
        rows = []
        for c, img in ((0, avg), (1, mx)):
            pad_ref[c, PAD0:PAD0 + H, :] = img
            # hoisted row-shifted views (dy = i - KPAD); center view is `img`
            rows.append([img if i == KPAD
                         else pad_ref[c, PAD0 - KPAD + i:PAD0 - KPAD + i + H, :]
                         for i in range(KSIZE)])

        # ---- 7x7 conv, 2 -> 1 channels, padding 3, stride 1, no bias --------
        # soft = sum_dx lane_shift( sum_{c,dy} w[c,dy,dx] * rows[c][dy], dx )
        # (only 7 lane rolls per group; the 98 MACs run on the VPU)
        soft = None
        for j in range(KSIZE):                             # dx = j - KPAD
            inner = None
            for c in range(2):
                for i in range(KSIZE):                     # dy = i - KPAD
                    term = w[c][i][j] * rows[c][i]
                    inner = term if inner is None else inner + term
            shifted = lane_shift(inner, j - KPAD)
            soft = shifted if soft is None else soft + shifted
        out_ref[g, 0] = soft

        # ---- Gumbel (eval mode): hard = (soft >= 0).float() ------------------
        # TODO(synk): training-mode Gumbel noise path (torch.rand_like based)
        # is not reproduced.
        hard = (soft >= 0.0).astype(jnp.float32)
        out_ref[g, 1] = hard

        # ---- ExpandMask(stride=1, padding=1): separable 3x3 ones-conv, >0.5 --
        # TODO(synk): dilate_stride > 1 (conv_transpose zero-insertion) path is
        # not implemented.
        pad_ref[0, PAD0:PAD0 + H, :] = hard                # reuse halo scratch
        rsum = (pad_ref[0, PAD0 - DPAD:PAD0 - DPAD + H, :]
                + hard
                + pad_ref[0, PAD0 + DPAD:PAD0 + DPAD + H, :])
        dsum = rsum + lane_shift(rsum, -DPAD) + lane_shift(rsum, DPAD)
        out_ref[g, 2] = (dsum > 0.5).astype(jnp.float32)


def spatial_mask_unit(x, maskconv_weight, *, vmem_block_budget=4 << 20):
    """x: (B, C, H, W) float; maskconv_weight: (1, 2, 7, 7) float (no bias)."""
    B, C, H, W = x.shape
    TB = max(1, 128 // W)          # images packed along the lane axis
    L = TB * W
    G = -(-B // TB)                # number of lane-packed groups

    # Groups per grid step: biggest block under a small VMEM budget (amortizes
    # the per-grid-step overhead for large batches; GB == 1 at tiny shapes).
    per_group_bytes = (C + 3) * H * L * 4 * 2      # in + out, double-buffered
    GB = int(max(1, min(G, vmem_block_budget // max(per_group_bytes, 1))))
    steps = -(-G // GB)
    G_pad = steps * GB
    B_pad = G_pad * TB

    xf = x.astype(jnp.float32)
    if B_pad != B:
        xf = jnp.concatenate(
            [xf, jnp.zeros((B_pad - B, C, H, W), jnp.float32)], axis=0)
    # (B_pad, C, H, W) -> (G_pad, C, H, TB*W): TB images side by side on lanes
    x_packed = (xf.reshape(G_pad, TB, C, H, W)
                .transpose(0, 2, 3, 1, 4)
                .reshape(G_pad, C, H, L))

    w_flat = maskconv_weight.reshape(-1).astype(jnp.float32)   # (98,)

    kernel = functools.partial(_spatial_mask_kernel, H=H, W=W, TB=TB, GB=GB)

    out_packed = pl.pallas_call(
        kernel,
        out_shape=jax.ShapeDtypeStruct((G_pad, 3, H, L), jnp.float32),
        grid_spec=pltpu.PrefetchScalarGridSpec(
            num_scalar_prefetch=0,
            grid=(steps,),
            in_specs=[
                pl.BlockSpec(memory_space=pltpu.MemorySpace.SMEM),    # weights
                pl.BlockSpec((GB, C, H, L), lambda s: (s, 0, 0, 0)),  # packed x
            ],
            out_specs=pl.BlockSpec((GB, 3, H, L), lambda s: (s, 0, 0, 0)),
            scratch_shapes=[pltpu.VMEM((2, PAD0 + H + KPAD, L), jnp.float32)],
        ),
        compiler_params=pltpu.CompilerParams(
            dimension_semantics=("parallel",)),
    )(w_flat, x_packed)

    # unpack: (G_pad, 3, H, TB*W) -> (B, 3, H, W)
    out = (out_packed.reshape(G_pad, 3, H, TB, W)
           .transpose(0, 3, 1, 2, 4)
           .reshape(B_pad, 3, H, W)[:B])
    soft = out[:, 0:1]
    hard = out[:, 1:2]
    hard_dilate = out[:, 2:3] > 0.5          # bool, matching torch ExpandMask

    # per-image sums (SpatialMask.spatial_inte_state) -- trivial wrapper reduce
    std_state = jnp.sum(hard, axis=(1, 2, 3))
    dil_state = jnp.sum(hard_dilate.astype(jnp.float32), axis=(1, 2, 3))

    std_mask = {
        "hard": hard,
        "soft": soft,
        "spatial_inte_state": std_state,
        "active_positions": jnp.sum(std_state),
        "total_positions": hard.size,
    }
    dilate_mask = {
        "hard": hard_dilate,
        "soft": None,
        "spatial_inte_state": dil_state,
        "active_positions": jnp.sum(dil_state),
        "total_positions": hard_dilate.size,
    }
    return {"std": std_mask, "dilate": dilate_mask}


if __name__ == "__main__":
    key = jax.random.PRNGKey(0)
    kx, kw = jax.random.split(key)

    B, C, H, W = 2, 4, 16, 16
    x = jax.random.normal(kx, (B, C, H, W), dtype=jnp.float32)

    # Deterministic init of maskconv: Conv2d(2, 1, 7, padding=3, bias=False)
    fan_in = 2 * KSIZE * KSIZE
    conv_w = jax.random.normal(kw, (1, 2, KSIZE, KSIZE), dtype=jnp.float32) * (2.0 / fan_in) ** 0.5
    # (attenconv is initialized in the PyTorch module but unused in forward -> omitted)

    out = spatial_mask_unit(x, conv_w)
    jax.block_until_ready(
        (out["std"]["soft"], out["std"]["hard"], out["dilate"]["hard"],
         out["std"]["spatial_inte_state"], out["dilate"]["spatial_inte_state"])
    )

    # pure-JAX reference check
    pooled = jnp.concatenate(
        [jnp.mean(x, axis=1, keepdims=True), jnp.max(x, axis=1, keepdims=True)], axis=1)
    soft_ref = lax.conv_general_dilated(
        pooled, conv_w, (1, 1), [(KPAD, KPAD), (KPAD, KPAD)],
        dimension_numbers=("NCHW", "OIHW", "NCHW"))
    hard_ref = (soft_ref >= 0.0).astype(jnp.float32)
    ones33 = jnp.ones((1, 1, 3, 3), jnp.float32)
    dil_ref = lax.conv_general_dilated(
        hard_ref, ones33, (1, 1), [(1, 1), (1, 1)],
        dimension_numbers=("NCHW", "OIHW", "NCHW")) > 0.5

    assert jnp.allclose(out["std"]["soft"], soft_ref, atol=1e-4), "soft mismatch"
    assert jnp.array_equal(out["std"]["hard"], hard_ref), "hard mismatch"
    assert jnp.array_equal(out["dilate"]["hard"], dil_ref), "dilate mismatch"
    assert jnp.allclose(out["std"]["spatial_inte_state"],
                        jnp.sum(hard_ref, axis=(1, 2, 3))), "std sums mismatch"
    assert jnp.allclose(out["dilate"]["spatial_inte_state"],
                        jnp.sum(dil_ref.astype(jnp.float32), axis=(1, 2, 3))), "dilate sums mismatch"

    print("KERNEL_OK")
</pallas_src>

<mosaic_0001>
module attributes {stable_mosaic.version = 11 : i64} {
  func.func @_spatial_mask_kernel(%arg0: i32, %arg1: memref<98xf32, #tpu.memory_space<smem>>, %arg2: memref<1x4x16x128xf32, #tpu.memory_space<vmem>>, %arg3: memref<1x3x16x128xf32, #tpu.memory_space<vmem>>, %arg4: memref<2x27x128xf32, #tpu.memory_space<vmem>>) attributes {dimension_semantics = [#tpu.dimension_semantics<parallel>], iteration_bounds = array<i64: 1>, scalar_prefetch = 0 : i64, scratch_operands = 1 : i64, tpu.core_type = #tpu.core_type<tc>, window_params = [{transform_indices = @transform_0, window_bounds = array<i64: 98>}, {transform_indices = @transform_1, window_bounds = array<i64: 1, 4, 16, 128>}, {transform_indices = @transform_2, window_bounds = array<i64: 1, 3, 16, 128>}]} {
    %cst = arith.constant 0.000000e+00 : f32
    %0 = vector.broadcast %cst : f32 to vector<3x128xf32>
    %c0 = arith.constant 0 : index
    %c5 = arith.constant 5 : index
    %c0_0 = arith.constant 0 : index
    %1 = vector.load %arg4[%c0, %c5, %c0_0] : memref<2x27x128xf32, #tpu.memory_space<vmem>>, vector<1x3x128xf32>
    %2 = vector.shape_cast %1 : vector<1x3x128xf32> to vector<3x128xf32>
    %3 = vector.shape_cast %0 : vector<3x128xf32> to vector<1x3x128xf32>
    tpu.vector_store %arg4[%c0, %c5, %c0_0], %3 {strides = array<i32>} : memref<2x27x128xf32, #tpu.memory_space<vmem>>, vector<1x3x128xf32>,
    %c0_1 = arith.constant 0 : index
    %c24 = arith.constant 24 : index
    %c0_2 = arith.constant 0 : index
    %4 = vector.load %arg4[%c0_1, %c24, %c0_2] : memref<2x27x128xf32, #tpu.memory_space<vmem>>, vector<1x3x128xf32>
    %5 = vector.shape_cast %4 : vector<1x3x128xf32> to vector<3x128xf32>
    %6 = vector.shape_cast %0 : vector<3x128xf32> to vector<1x3x128xf32>
    tpu.vector_store %arg4[%c0_1, %c24, %c0_2], %6 {strides = array<i32>} : memref<2x27x128xf32, #tpu.memory_space<vmem>>, vector<1x3x128xf32>,
    %c1 = arith.constant 1 : index
    %c5_3 = arith.constant 5 : index
    %c0_4 = arith.constant 0 : index
    %7 = vector.load %arg4[%c1, %c5_3, %c0_4] : memref<2x27x128xf32, #tpu.memory_space<vmem>>, vector<1x3x128xf32>
    %8 = vector.shape_cast %7 : vector<1x3x128xf32> to vector<3x128xf32>
    %9 = vector.shape_cast %0 : vector<3x128xf32> to vector<1x3x128xf32>
    tpu.vector_store %arg4[%c1, %c5_3, %c0_4], %9 {strides = array<i32>} : memref<2x27x128xf32, #tpu.memory_space<vmem>>, vector<1x3x128xf32>,
    %c1_5 = arith.constant 1 : index
    %c24_6 = arith.constant 24 : index
    %c0_7 = arith.constant 0 : index
    %10 = vector.load %arg4[%c1_5, %c24_6, %c0_7] : memref<2x27x128xf32, #tpu.memory_space<vmem>>, vector<1x3x128xf32>
    %11 = vector.shape_cast %10 : vector<1x3x128xf32> to vector<3x128xf32>
    %12 = vector.shape_cast %0 : vector<3x128xf32> to vector<1x3x128xf32>
    tpu.vector_store %arg4[%c1_5, %c24_6, %c0_7], %12 {strides = array<i32>} : memref<2x27x128xf32, #tpu.memory_space<vmem>>, vector<1x3x128xf32>,
    %13 = tpu.iota {dimensions = array<i32: 1>} : vector<16x128xi32>
    %c16_i32 = arith.constant 16 : i32
    %c0_i32 = arith.constant 0 : i32
    %14 = arith.cmpi eq, %c16_i32, %c0_i32 : i32
    %c1_i32 = arith.constant 1 : i32
    %15 = arith.select %14, %c1_i32, %c16_i32 : i32
    %16 = vector.broadcast %15 : i32 to vector<16x128xi32>
    %17 = arith.remsi %13, %16 : vector<16x128xi32>
    %c0_i32_8 = arith.constant 0 : i32
    %18 = vector.broadcast %c0_i32_8 : i32 to vector<16x128xi32>
    %19 = arith.cmpi ne, %17, %18 : vector<16x128xi32>
    %c0_i32_9 = arith.constant 0 : i32
    %20 = vector.broadcast %c0_i32_9 : i32 to vector<16x128xi32>
    %21 = arith.cmpi slt, %17, %20 : vector<16x128xi32>
    %c0_i32_10 = arith.constant 0 : i32
    %22 = arith.cmpi slt, %15, %c0_i32_10 : i32
    %23 = vector.broadcast %22 : i1 to vector<16x128xi1>
    %24 = vector.broadcast %23 : vector<16x128xi1> to vector<16x128xi1>
    %25 = arith.xori %21, %24 : vector<16x128xi1>
    %26 = arith.andi %25, %19 : vector<16x128xi1>
    %27 = vector.broadcast %15 : i32 to vector<16x128xi32>
    %28 = arith.addi %17, %27 : vector<16x128xi32>
    %29 = arith.select %26, %28, %17 : vector<16x128xi1>, vector<16x128xi32>
    %c-3_i32 = arith.constant -3 : i32
    %30 = vector.broadcast %c-3_i32 : i32 to vector<16x128xi32>
    %31 = arith.addi %29, %30 : vector<16x128xi32>
    %c0_i32_11 = arith.constant 0 : i32
    %32 = vector.broadcast %c0_i32_11 : i32 to vector<16x128xi32>
    %33 = arith.cmpi sge, %31, %32 : vector<16x128xi32>
    %c-3_i32_12 = arith.constant -3 : i32
    %34 = vector.broadcast %c-3_i32_12 : i32 to vector<16x128xi32>
    %35 = arith.addi %29, %34 : vector<16x128xi32>
    %c16_i32_13 = arith.constant 16 : i32
    %36 = vector.broadcast %c16_i32_13 : i32 to vector<16x128xi32>
    %37 = arith.cmpi slt, %35, %36 : vector<16x128xi32>
    %38 = arith.andi %33, %37 : vector<16x128xi1>
    %c-2_i32 = arith.constant -2 : i32
    %39 = vector.broadcast %c-2_i32 : i32 to vector<16x128xi32>
    %40 = arith.addi %29, %39 : vector<16x128xi32>
    %c0_i32_14 = arith.constant 0 : i32
    %41 = vector.broadcast %c0_i32_14 : i32 to vector<16x128xi32>
    %42 = arith.cmpi sge, %40, %41 : vector<16x128xi32>
    %c-2_i32_15 = arith.constant -2 : i32
    %43 = vector.broadcast %c-2_i32_15 : i32 to vector<16x128xi32>
    %44 = arith.addi %29, %43 : vector<16x128xi32>
    %c16_i32_16 = arith.constant 16 : i32
    %45 = vector.broadcast %c16_i32_16 : i32 to vector<16x128xi32>
    %46 = arith.cmpi slt, %44, %45 : vector<16x128xi32>
    %47 = arith.andi %42, %46 : vector<16x128xi1>
    %c-1_i32 = arith.constant -1 : i32
    %48 = vector.broadcast %c-1_i32 : i32 to vector<16x128xi32>
    %49 = arith.addi %29, %48 : vector<16x128xi32>
    %c0_i32_17 = arith.constant 0 : i32
    %50 = vector.broadcast %c0_i32_17 : i32 to vector<16x128xi32>
    %51 = arith.cmpi sge, %49, %50 : vector<16x128xi32>
    %c-1_i32_18 = arith.constant -1 : i32
    %52 = vector.broadcast %c-1_i32_18 : i32 to vector<16x128xi32>
    %53 = arith.addi %29, %52 : vector<16x128xi32>
    %c16_i32_19 = arith.constant 16 : i32
    %54 = vector.broadcast %c16_i32_19 : i32 to vector<16x128xi32>
    %55 = arith.cmpi slt, %53, %54 : vector<16x128xi32>
    %56 = arith.andi %51, %55 : vector<16x128xi1>
    %c1_i32_20 = arith.constant 1 : i32
    %57 = vector.broadcast %c1_i32_20 : i32 to vector<16x128xi32>
    %58 = arith.addi %29, %57 : vector<16x128xi32>
    %c0_i32_21 = arith.constant 0 : i32
    %59 = vector.broadcast %c0_i32_21 : i32 to vector<16x128xi32>
    %60 = arith.cmpi sge, %58, %59 : vector<16x128xi32>
    %c1_i32_22 = arith.constant 1 : i32
    %61 = vector.broadcast %c1_i32_22 : i32 to vector<16x128xi32>
    %62 = arith.addi %29, %61 : vector<16x128xi32>
    %c16_i32_23 = arith.constant 16 : i32
    %63 = vector.broadcast %c16_i32_23 : i32 to vector<16x128xi32>
    %64 = arith.cmpi slt, %62, %63 : vector<16x128xi32>
    %65 = arith.andi %60, %64 : vector<16x128xi1>
    %c2_i32 = arith.constant 2 : i32
    %66 = vector.broadcast %c2_i32 : i32 to vector<16x128xi32>
    %67 = arith.addi %29, %66 : vector<16x128xi32>
    %c0_i32_24 = arith.constant 0 : i32
    %68 = vector.broadcast %c0_i32_24 : i32 to vector<16x128xi32>
    %69 = arith.cmpi sge, %67, %68 : vector<16x128xi32>
    %c2_i32_25 = arith.constant 2 : i32
    %70 = vector.broadcast %c2_i32_25 : i32 to vector<16x128xi32>
    %71 = arith.addi %29, %70 : vector<16x128xi32>
    %c16_i32_26 = arith.constant 16 : i32
    %72 = vector.broadcast %c16_i32_26 : i32 to vector<16x128xi32>
    %73 = arith.cmpi slt, %71, %72 : vector<16x128xi32>
    %74 = arith.andi %69, %73 : vector<16x128xi1>
    %c3_i32 = arith.constant 3 : i32
    %75 = vector.broadcast %c3_i32 : i32 to vector<16x128xi32>
    %76 = arith.addi %29, %75 : vector<16x128xi32>
    %c0_i32_27 = arith.constant 0 : i32
    %77 = vector.broadcast %c0_i32_27 : i32 to vector<16x128xi32>
    %78 = arith.cmpi sge, %76, %77 : vector<16x128xi32>
    %c3_i32_28 = arith.constant 3 : i32
    %79 = vector.broadcast %c3_i32_28 : i32 to vector<16x128xi32>
    %80 = arith.addi %29, %79 : vector<16x128xi32>
    %c16_i32_29 = arith.constant 16 : i32
    %81 = vector.broadcast %c16_i32_29 : i32 to vector<16x128xi32>
    %82 = arith.cmpi slt, %80, %81 : vector<16x128xi32>
    %83 = arith.andi %78, %82 : vector<16x128xi1>
    %c0_30 = arith.constant 0 : index
    %84 = memref.load %arg1[%c0_30] : memref<98xf32, #tpu.memory_space<smem>>
    %c1_31 = arith.constant 1 : index
    %85 = memref.load %arg1[%c1_31] : memref<98xf32, #tpu.memory_space<smem>>
    %c2 = arith.constant 2 : index
    %86 = memref.load %arg1[%c2] : memref<98xf32, #tpu.memory_space<smem>>
    %c3 = arith.constant 3 : index
    %87 = memref.load %arg1[%c3] : memref<98xf32, #tpu.memory_space<smem>>
    %c4 = arith.constant 4 : index
    %88 = memref.load %arg1[%c4] : memref<98xf32, #tpu.memory_space<smem>>
    %c5_32 = arith.constant 5 : index
    %89 = memref.load %arg1[%c5_32] : memref<98xf32, #tpu.memory_space<smem>>
    %c6 = arith.constant 6 : index
    %90 = memref.load %arg1[%c6] : memref<98xf32, #tpu.memory_space<smem>>
    %c7 = arith.constant 7 : index
    %91 = memref.load %arg1[%c7] : memref<98xf32, #tpu.memory_space<smem>>
    %c8 = arith.constant 8 : index
    %92 = memref.load %arg1[%c8] : memref<98xf32, #tpu.memory_space<smem>>
    %c9 = arith.constant 9 : index
    %93 = memref.load %arg1[%c9] : memref<98xf32, #tpu.memory_space<smem>>
    %c10 = arith.constant 10 : index
    %94 = memref.load %arg1[%c10] : memref<98xf32, #tpu.memory_space<smem>>
    %c11 = arith.constant 11 : index
    %95 = memref.load %arg1[%c11] : memref<98xf32, #tpu.memory_space<smem>>
    %c12 = arith.constant 12 : index
    %96 = memref.load %arg1[%c12] : memref<98xf32, #tpu.memory_space<smem>>
    %c13 = arith.constant 13 : index
    %97 = memref.load %arg1[%c13] : memref<98xf32, #tpu.memory_space<smem>>
    %c14 = arith.constant 14 : index
    %98 = memref.load %arg1[%c14] : memref<98xf32, #tpu.memory_space<smem>>
    %c15 = arith.constant 15 : index
    %99 = memref.load %arg1[%c15] : memref<98xf32, #tpu.memory_space<smem>>
    %c16 = arith.constant 16 : index
    %100 = memref.load %arg1[%c16] : memref<98xf32, #tpu.memory_space<smem>>
    %c17 = arith.constant 17 : index
    %101 = memref.load %arg1[%c17] : memref<98xf32, #tpu.memory_space<smem>>
    %c18 = arith.constant 18 : index
    %102 = memref.load %arg1[%c18] : memref<98xf32, #tpu.memory_space<smem>>
    %c19 = arith.constant 19 : index
    %103 = memref.load %arg1[%c19] : memref<98xf32, #tpu.memory_space<smem>>
    %c20 = arith.constant 20 : index
    %104 = memref.load %arg1[%c20] : memref<98xf32, #tpu.memory_space<smem>>
    %c21 = arith.constant 21 : index
    %105 = memref.load %arg1[%c21] : memref<98xf32, #tpu.memory_space<smem>>
    %c22 = arith.constant 22 : index
    %106 = memref.load %arg1[%c22] : memref<98xf32, #tpu.memory_space<smem>>
    %c23 = arith.constant 23 : index
    %107 = memref.load %arg1[%c23] : memref<98xf32, #tpu.memory_space<smem>>
    %c24_33 = arith.constant 24 : index
    %108 = memref.load %arg1[%c24_33] : memref<98xf32, #tpu.memory_space<smem>>
    %c25 = arith.constant 25 : index
    %109 = memref.load %arg1[%c25] : memref<98xf32, #tpu.memory_space<smem>>
    %c26 = arith.constant 26 : index
    %110 = memref.load %arg1[%c26] : memref<98xf32, #tpu.memory_space<smem>>
    %c27 = arith.constant 27 : index
    %111 = memref.load %arg1[%c27] : memref<98xf32, #tpu.memory_space<smem>>
    %c28 = arith.constant 28 : index
    %112 = memref.load %arg1[%c28] : memref<98xf32, #tpu.memory_space<smem>>
    %c29 = arith.constant 29 : index
    %113 = memref.load %arg1[%c29] : memref<98xf32, #tpu.memory_space<smem>>
    %c30 = arith.constant 30 : index
    %114 = memref.load %arg1[%c30] : memref<98xf32, #tpu.memory_space<smem>>
    %c31 = arith.constant 31 : index
    %115 = memref.load %arg1[%c31] : memref<98xf32, #tpu.memory_space<smem>>
    %c32 = arith.constant 32 : index
    %116 = memref.load %arg1[%c32] : memref<98xf32, #tpu.memory_space<smem>>
    %c33 = arith.constant 33 : index
    %117 = memref.load %arg1[%c33] : memref<98xf32, #tpu.memory_space<smem>>
    %c34 = arith.constant 34 : index
    %118 = memref.load %arg1[%c34] : memref<98xf32, #tpu.memory_space<smem>>
    %c35 = arith.constant 35 : index
    %119 = memref.load %arg1[%c35] : memref<98xf32, #tpu.memory_space<smem>>
    %c36 = arith.constant 36 : index
    %120 = memref.load %arg1[%c36] : memref<98xf32, #tpu.memory_space<smem>>
    %c37 = arith.constant 37 : index
    %121 = memref.load %arg1[%c37] : memref<98xf32, #tpu.memory_space<smem>>
    %c38 = arith.constant 38 : index
    %122 = memref.load %arg1[%c38] : memref<98xf32, #tpu.memory_space<smem>>
    %c39 = arith.constant 39 : index
    %123 = memref.load %arg1[%c39] : memref<98xf32, #tpu.memory_space<smem>>
    %c40 = arith.constant 40 : index
    %124 = memref.load %arg1[%c40] : memref<98xf32, #tpu.memory_space<smem>>
    %c41 = arith.constant 41 : index
    %125 = memref.load %arg1[%c41] : memref<98xf32, #tpu.memory_space<smem>>
    %c42 = arith.constant 42 : index
    %126 = memref.load %arg1[%c42] : memref<98xf32, #tpu.memory_space<smem>>
    %c43 = arith.constant 43 : index
    %127 = memref.load %arg1[%c43] : memref<98xf32, #tpu.memory_space<smem>>
    %c44 = arith.constant 44 : index
    %128 = memref.load %arg1[%c44] : memref<98xf32, #tpu.memory_space<smem>>
    %c45 = arith.constant 45 : index
    %129 = memref.load %arg1[%c45] : memref<98xf32, #tpu.memory_space<smem>>
    %c46 = arith.constant 46 : index
    %130 = memref.load %arg1[%c46] : memref<98xf32, #tpu.memory_space<smem>>
    %c47 = arith.constant 47 : index
    %131 = memref.load %arg1[%c47] : memref<98xf32, #tpu.memory_space<smem>>
    %c48 = arith.constant 48 : index
    %132 = memref.load %arg1[%c48] : memref<98xf32, #tpu.memory_space<smem>>
    %c49 = arith.constant 49 : index
    %133 = memref.load %arg1[%c49] : memref<98xf32, #tpu.memory_space<smem>>
    %c50 = arith.constant 50 : index
    %134 = memref.load %arg1[%c50] : memref<98xf32, #tpu.memory_space<smem>>
    %c51 = arith.constant 51 : index
    %135 = memref.load %arg1[%c51] : memref<98xf32, #tpu.memory_space<smem>>
    %c52 = arith.constant 52 : index
    %136 = memref.load %arg1[%c52] : memref<98xf32, #tpu.memory_space<smem>>
    %c53 = arith.constant 53 : index
    %137 = memref.load %arg1[%c53] : memref<98xf32, #tpu.memory_space<smem>>
    %c54 = arith.constant 54 : index
    %138 = memref.load %arg1[%c54] : memref<98xf32, #tpu.memory_space<smem>>
    %c55 = arith.constant 55 : index
    %139 = memref.load %arg1[%c55] : memref<98xf32, #tpu.memory_space<smem>>
    %c56 = arith.constant 56 : index
    %140 = memref.load %arg1[%c56] : memref<98xf32, #tpu.memory_space<smem>>
    %c57 = arith.constant 57 : index
    %141 = memref.load %arg1[%c57] : memref<98xf32, #tpu.memory_space<smem>>
    %c58 = arith.constant 58 : index
    %142 = memref.load %arg1[%c58] : memref<98xf32, #tpu.memory_space<smem>>
    %c59 = arith.constant 59 : index
    %143 = memref.load %arg1[%c59] : memref<98xf32, #tpu.memory_space<smem>>
    %c60 = arith.constant 60 : index
    %144 = memref.load %arg1[%c60] : memref<98xf32, #tpu.memory_space<smem>>
    %c61 = arith.constant 61 : index
    %145 = memref.load %arg1[%c61] : memref<98xf32, #tpu.memory_space<smem>>
    %c62 = arith.constant 62 : index
    %146 = memref.load %arg1[%c62] : memref<98xf32, #tpu.memory_space<smem>>
    %c63 = arith.constant 63 : index
    %147 = memref.load %arg1[%c63] : memref<98xf32, #tpu.memory_space<smem>>
    %c64 = arith.constant 64 : index
    %148 = memref.load %arg1[%c64] : memref<98xf32, #tpu.memory_space<smem>>
    %c65 = arith.constant 65 : index
    %149 = memref.load %arg1[%c65] : memref<98xf32, #tpu.memory_space<smem>>
    %c66 = arith.constant 66 : index
    %150 = memref.load %arg1[%c66] : memref<98xf32, #tpu.memory_space<smem>>
    %c67 = arith.constant 67 : index
    %151 = memref.load %arg1[%c67] : memref<98xf32, #tpu.memory_space<smem>>
    %c68 = arith.constant 68 : index
    %152 = memref.load %arg1[%c68] : memref<98xf32, #tpu.memory_space<smem>>
    %c69 = arith.constant 69 : index
    %153 = memref.load %arg1[%c69] : memref<98xf32, #tpu.memory_space<smem>>
    %c70 = arith.constant 70 : index
    %154 = memref.load %arg1[%c70] : memref<98xf32, #tpu.memory_space<smem>>
    %c71 = arith.constant 71 : index
    %155 = memref.load %arg1[%c71] : memref<98xf32, #tpu.memory_space<smem>>
    %c72 = arith.constant 72 : index
    %156 = memref.load %arg1[%c72] : memref<98xf32, #tpu.memory_space<smem>>
    %c73 = arith.constant 73 : index
    %157 = memref.load %arg1[%c73] : memref<98xf32, #tpu.memory_space<smem>>
    %c74 = arith.constant 74 : index
    %158 = memref.load %arg1[%c74] : memref<98xf32, #tpu.memory_space<smem>>
    %c75 = arith.constant 75 : index
    %159 = memref.load %arg1[%c75] : memref<98xf32, #tpu.memory_space<smem>>
    %c76 = arith.constant 76 : index
    %160 = memref.load %arg1[%c76] : memref<98xf32, #tpu.memory_space<smem>>
    %c77 = arith.constant 77 : index
    %161 = memref.load %arg1[%c77] : memref<98xf32, #tpu.memory_space<smem>>
    %c78 = arith.constant 78 : index
    %162 = memref.load %arg1[%c78] : memref<98xf32, #tpu.memory_space<smem>>
    %c79 = arith.constant 79 : index
    %163 = memref.load %arg1[%c79] : memref<98xf32, #tpu.memory_space<smem>>
    %c80 = arith.constant 80 : index
    %164 = memref.load %arg1[%c80] : memref<98xf32, #tpu.memory_space<smem>>
    %c81 = arith.constant 81 : index
    %165 = memref.load %arg1[%c81] : memref<98xf32, #tpu.memory_space<smem>>
    %c82 = arith.constant 82 : index
    %166 = memref.load %arg1[%c82] : memref<98xf32, #tpu.memory_space<smem>>
    %c83 = arith.constant 83 : index
    %167 = memref.load %arg1[%c83] : memref<98xf32, #tpu.memory_space<smem>>
    %c84 = arith.constant 84 : index
    %168 = memref.load %arg1[%c84] : memref<98xf32, #tpu.memory_space<smem>>
    %c85 = arith.constant 85 : index
    %169 = memref.load %arg1[%c85] : memref<98xf32, #tpu.memory_space<smem>>
    %c86 = arith.constant 86 : index
    %170 = memref.load %arg1[%c86] : memref<98xf32, #tpu.memory_space<smem>>
    %c87 = arith.constant 87 : index
    %171 = memref.load %arg1[%c87] : memref<98xf32, #tpu.memory_space<smem>>
    %c88 = arith.constant 88 : index
    %172 = memref.load %arg1[%c88] : memref<98xf32, #tpu.memory_space<smem>>
    %c89 = arith.constant 89 : index
    %173 = memref.load %arg1[%c89] : memref<98xf32, #tpu.memory_space<smem>>
    %c90 = arith.constant 90 : index
    %174 = memref.load %arg1[%c90] : memref<98xf32, #tpu.memory_space<smem>>
    %c91 = arith.constant 91 : index
    %175 = memref.load %arg1[%c91] : memref<98xf32, #tpu.memory_space<smem>>
    %c92 = arith.constant 92 : index
    %176 = memref.load %arg1[%c92] : memref<98xf32, #tpu.memory_space<smem>>
    %c93 = arith.constant 93 : index
    %177 = memref.load %arg1[%c93] : memref<98xf32, #tpu.memory_space<smem>>
    %c94 = arith.constant 94 : index
    %178 = memref.load %arg1[%c94] : memref<98xf32, #tpu.memory_space<smem>>
    %c95 = arith.constant 95 : index
    %179 = memref.load %arg1[%c95] : memref<98xf32, #tpu.memory_space<smem>>
    %c96 = arith.constant 96 : index
    %180 = memref.load %arg1[%c96] : memref<98xf32, #tpu.memory_space<smem>>
    %c97 = arith.constant 97 : index
    %181 = memref.load %arg1[%c97] : memref<98xf32, #tpu.memory_space<smem>>
    %c0_34 = arith.constant 0 : index
    %c0_35 = arith.constant 0 : index
    %c0_36 = arith.constant 0 : index
    %c0_37 = arith.constant 0 : index
    %182 = vector.load %arg2[%c0_34, %c0_35, %c0_36, %c0_37] : memref<1x4x16x128xf32, #tpu.memory_space<vmem>>, vector<1x4x16x128xf32>
    %183 = vector.shape_cast %182 : vector<1x4x16x128xf32> to vector<4x16x128xf32>
    %cst_38 = arith.constant dense<0.000000e+00> : vector<16x128xf32>
    %184 = vector.multi_reduction <add>, %183, %cst_38 [0] : vector<4x16x128xf32> to vector<16x128xf32>
    %cst_39 = arith.constant 4.000000e+00 : f32
    %185 = vector.broadcast %cst_39 : f32 to vector<16x128xf32>
    %186 = arith.divf %184, %185 : vector<16x128xf32>
    %cst_40 = arith.constant dense<0xFF800000> : vector<16x128xf32>
    %187 = vector.multi_reduction <maximumf>, %183, %cst_40 [0] : vector<4x16x128xf32> to vector<16x128xf32>
    %c0_41 = arith.constant 0 : index
    %c8_42 = arith.constant 8 : index
    %c0_43 = arith.constant 0 : index
    %188 = vector.load %arg4[%c0_41, %c8_42, %c0_43] : memref<2x27x128xf32, #tpu.memory_space<vmem>>, vector<1x16x128xf32>
    %189 = vector.shape_cast %188 : vector<1x16x128xf32> to vector<16x128xf32>
    %190 = vector.shape_cast %186 : vector<16x128xf32> to vector<1x16x128xf32>
    tpu.vector_store %arg4[%c0_41, %c8_42, %c0_43], %190 {strides = array<i32>} : memref<2x27x128xf32, #tpu.memory_space<vmem>>, vector<1x16x128xf32>,
    %c0_44 = arith.constant 0 : index
    %c5_45 = arith.constant 5 : index
    %c0_46 = arith.constant 0 : index
    %191 = vector.load %arg4[%c0_44, %c5_45, %c0_46] : memref<2x27x128xf32, #tpu.memory_space<vmem>>, vector<1x16x128xf32>
    %192 = vector.shape_cast %191 : vector<1x16x128xf32> to vector<16x128xf32>
    %c0_47 = arith.constant 0 : index
    %c6_48 = arith.constant 6 : index
    %c0_49 = arith.constant 0 : index
    %193 = vector.load %arg4[%c0_47, %c6_48, %c0_49] : memref<2x27x128xf32, #tpu.memory_space<vmem>>, vector<1x16x128xf32>
    %194 = vector.shape_cast %193 : vector<1x16x128xf32> to vector<16x128xf32>
    %c0_50 = arith.constant 0 : index
    %c7_51 = arith.constant 7 : index
    %c0_52 = arith.constant 0 : index
    %195 = vector.load %arg4[%c0_50, %c7_51, %c0_52] : memref<2x27x128xf32, #tpu.memory_space<vmem>>, vector<1x16x128xf32>
    %196 = vector.shape_cast %195 : vector<1x16x128xf32> to vector<16x128xf32>
    %c0_53 = arith.constant 0 : index
    %c9_54 = arith.constant 9 : index
    %c0_55 = arith.constant 0 : index
    %197 = vector.load %arg4[%c0_53, %c9_54, %c0_55] : memref<2x27x128xf32, #tpu.memory_space<vmem>>, vector<1x16x128xf32>
    %198 = vector.shape_cast %197 : vector<1x16x128xf32> to vector<16x128xf32>
    %c0_56 = arith.constant 0 : index
    %c10_57 = arith.constant 10 : index
    %c0_58 = arith.constant 0 : index
    %199 = vector.load %arg4[%c0_56, %c10_57, %c0_58] : memref<2x27x128xf32, #tpu.memory_space<vmem>>, vector<1x16x128xf32>
    %200 = vector.shape_cast %199 : vector<1x16x128xf32> to vector<16x128xf32>
    %c0_59 = arith.constant 0 : index
    %c11_60 = arith.constant 11 : index
    %c0_61 = arith.constant 0 : index
    %201 = vector.load %arg4[%c0_59, %c11_60, %c0_61] : memref<2x27x128xf32, #tpu.memory_space<vmem>>, vector<1x16x128xf32>
    %202 = vector.shape_cast %201 : vector<1x16x128xf32> to vector<16x128xf32>
    %c1_62 = arith.constant 1 : index
    %c8_63 = arith.constant 8 : index
    %c0_64 = arith.constant 0 : index
    %203 = vector.load %arg4[%c1_62, %c8_63, %c0_64] : memref<2x27x128xf32, #tpu.memory_space<vmem>>, vector<1x16x128xf32>
    %204 = vector.shape_cast %203 : vector<1x16x128xf32> to vector<16x128xf32>
    %205 = vector.shape_cast %187 : vector<16x128xf32> to vector<1x16x128xf32>
    tpu.vector_store %arg4[%c1_62, %c8_63, %c0_64], %205 {strides = array<i32>} : memref<2x27x128xf32, #tpu.memory_space<vmem>>, vector<1x16x128xf32>,
    %c1_65 = arith.constant 1 : index
    %c5_66 = arith.constant 5 : index
    %c0_67 = arith.constant 0 : index
    %206 = vector.load %arg4[%c1_65, %c5_66, %c0_67] : memref<2x27x128xf32, #tpu.memory_space<vmem>>, vector<1x16x128xf32>
    %207 = vector.shape_cast %206 : vector<1x16x128xf32> to vector<16x128xf32>
    %c1_68 = arith.constant 1 : index
    %c6_69 = arith.constant 6 : index
    %c0_70 = arith.constant 0 : index
    %208 = vector.load %arg4[%c1_68, %c6_69, %c0_70] : memref<2x27x128xf32, #tpu.memory_space<vmem>>, vector<1x16x128xf32>
    %209 = vector.shape_cast %208 : vector<1x16x128xf32> to vector<16x128xf32>
    %c1_71 = arith.constant 1 : index
    %c7_72 = arith.constant 7 : index
    %c0_73 = arith.constant 0 : index
    %210 = vector.load %arg4[%c1_71, %c7_72, %c0_73] : memref<2x27x128xf32, #tpu.memory_space<vmem>>, vector<1x16x128xf32>
    %211 = vector.shape_cast %210 : vector<1x16x128xf32> to vector<16x128xf32>
    %c1_74 = arith.constant 1 : index
    %c9_75 = arith.constant 9 : index
    %c0_76 = arith.constant 0 : index
    %212 = vector.load %arg4[%c1_74, %c9_75, %c0_76] : memref<2x27x128xf32, #tpu.memory_space<vmem>>, vector<1x16x128xf32>
    %213 = vector.shape_cast %212 : vector<1x16x128xf32> to vector<16x128xf32>
    %c1_77 = arith.constant 1 : index
    %c10_78 = arith.constant 10 : index
    %c0_79 = arith.constant 0 : index
    %214 = vector.load %arg4[%c1_77, %c10_78, %c0_79] : memref<2x27x128xf32, #tpu.memory_space<vmem>>, vector<1x16x128xf32>
    %215 = vector.shape_cast %214 : vector<1x16x128xf32> to vector<16x128xf32>
    %c1_80 = arith.constant 1 : index
    %c11_81 = arith.constant 11 : index
    %c0_82 = arith.constant 0 : index
    %216 = vector.load %arg4[%c1_80, %c11_81, %c0_82] : memref<2x27x128xf32, #tpu.memory_space<vmem>>, vector<1x16x128xf32>
    %217 = vector.shape_cast %216 : vector<1x16x128xf32> to vector<16x128xf32>
    %218 = vector.broadcast %84 : f32 to vector<16x128xf32>
    %219 = arith.mulf %218, %192 : vector<16x128xf32>
    %220 = vector.broadcast %91 : f32 to vector<16x128xf32>
    %221 = arith.mulf %220, %194 : vector<16x128xf32>
    %222 = arith.addf %219, %221 : vector<16x128xf32>
    %223 = vector.broadcast %98 : f32 to vector<16x128xf32>
    %224 = arith.mulf %223, %196 : vector<16x128xf32>
    %225 = arith.addf %222, %224 : vector<16x128xf32>
    %226 = vector.broadcast %105 : f32 to vector<16x128xf32>
    %227 = arith.mulf %226, %186 : vector<16x128xf32>
    %228 = arith.addf %225, %227 : vector<16x128xf32>
    %229 = vector.broadcast %112 : f32 to vector<16x128xf32>
    %230 = arith.mulf %229, %198 : vector<16x128xf32>
    %231 = arith.addf %228, %230 : vector<16x128xf32>
    %232 = vector.broadcast %119 : f32 to vector<16x128xf32>
    %233 = arith.mulf %232, %200 : vector<16x128xf32>
    %234 = arith.addf %231, %233 : vector<16x128xf32>
    %235 = vector.broadcast %126 : f32 to vector<16x128xf32>
    %236 = arith.mulf %235, %202 : vector<16x128xf32>
    %237 = arith.addf %234, %236 : vector<16x128xf32>
    %238 = vector.broadcast %133 : f32 to vector<16x128xf32>
    %239 = arith.mulf %238, %207 : vector<16x128xf32>
    %240 = arith.addf %237, %239 : vector<16x128xf32>
    %241 = vector.broadcast %140 : f32 to vector<16x128xf32>
    %242 = arith.mulf %241, %209 : vector<16x128xf32>
    %243 = arith.addf %240, %242 : vector<16x128xf32>
    %244 = vector.broadcast %147 : f32 to vector<16x128xf32>
    %245 = arith.mulf %244, %211 : vector<16x128xf32>
    %246 = arith.addf %243, %245 : vector<16x128xf32>
    %247 = vector.broadcast %154 : f32 to vector<16x128xf32>
    %248 = arith.mulf %247, %187 : vector<16x128xf32>
    %249 = arith.addf %246, %248 : vector<16x128xf32>
    %250 = vector.broadcast %161 : f32 to vector<16x128xf32>
    %251 = arith.mulf %250, %213 : vector<16x128xf32>
    %252 = arith.addf %249, %251 : vector<16x128xf32>
    %253 = vector.broadcast %168 : f32 to vector<16x128xf32>
    %254 = arith.mulf %253, %215 : vector<16x128xf32>
    %255 = arith.addf %252, %254 : vector<16x128xf32>
    %256 = vector.broadcast %175 : f32 to vector<16x128xf32>
    %257 = arith.mulf %256, %217 : vector<16x128xf32>
    %258 = arith.addf %255, %257 : vector<16x128xf32>
    %c3_i32_83 = arith.constant 3 : i32
    %259 = tpu.dynamic_rotate %258 by %c3_i32_83 dim 1 : vector<16x128xf32>, i32 -> vector<16x128xf32>
    %cst_84 = arith.constant 0.000000e+00 : f32
    %260 = vector.broadcast %cst_84 : f32 to vector<16x128xf32>
    %261 = arith.select %38, %259, %260 : vector<16x128xi1>, vector<16x128xf32>
    %262 = vector.broadcast %85 : f32 to vector<16x128xf32>
    %263 = arith.mulf %262, %192 : vector<16x128xf32>
    %264 = vector.broadcast %92 : f32 to vector<16x128xf32>
    %265 = arith.mulf %264, %194 : vector<16x128xf32>
    %266 = arith.addf %263, %265 : vector<16x128xf32>
    %267 = vector.broadcast %99 : f32 to vector<16x128xf32>
    %268 = arith.mulf %267, %196 : vector<16x128xf32>
    %269 = arith.addf %266, %268 : vector<16x128xf32>
    %270 = vector.broadcast %106 : f32 to vector<16x128xf32>
    %271 = arith.mulf %270, %186 : vector<16x128xf32>
    %272 = arith.addf %269, %271 : vector<16x128xf32>
    %273 = vector.broadcast %113 : f32 to vector<16x128xf32>
    %274 = arith.mulf %273, %198 : vector<16x128xf32>
    %275 = arith.addf %272, %274 : vector<16x128xf32>
    %276 = vector.broadcast %120 : f32 to vector<16x128xf32>
    %277 = arith.mulf %276, %200 : vector<16x128xf32>
    %278 = arith.addf %275, %277 : vector<16x128xf32>
    %279 = vector.broadcast %127 : f32 to vector<16x128xf32>
    %280 = arith.mulf %279, %202 : vector<16x128xf32>
    %281 = arith.addf %278, %280 : vector<16x128xf32>
    %282 = vector.broadcast %134 : f32 to vector<16x128xf32>
    %283 = arith.mulf %282, %207 : vector<16x128xf32>
    %284 = arith.addf %281, %283 : vector<16x128xf32>
    %285 = vector.broadcast %141 : f32 to vector<16x128xf32>
    %286 = arith.mulf %285, %209 : vector<16x128xf32>
    %287 = arith.addf %284, %286 : vector<16x128xf32>
    %288 = vector.broadcast %148 : f32 to vector<16x128xf32>
    %289 = arith.mulf %288, %211 : vector<16x128xf32>
    %290 = arith.addf %287, %289 : vector<16x128xf32>
    %291 = vector.broadcast %155 : f32 to vector<16x128xf32>
    %292 = arith.mulf %291, %187 : vector<16x128xf32>
    %293 = arith.addf %290, %292 : vector<16x128xf32>
    %294 = vector.broadcast %162 : f32 to vector<16x128xf32>
    %295 = arith.mulf %294, %213 : vector<16x128xf32>
    %296 = arith.addf %293, %295 : vector<16x128xf32>
    %297 = vector.broadcast %169 : f32 to vector<16x128xf32>
    %298 = arith.mulf %297, %215 : vector<16x128xf32>
    %299 = arith.addf %296, %298 : vector<16x128xf32>
    %300 = vector.broadcast %176 : f32 to vector<16x128xf32>
    %301 = arith.mulf %300, %217 : vector<16x128xf32>
    %302 = arith.addf %299, %301 : vector<16x128xf32>
    %c2_i32_85 = arith.constant 2 : i32
    %303 = tpu.dynamic_rotate %302 by %c2_i32_85 dim 1 : vector<16x128xf32>, i32 -> vector<16x128xf32>
    %cst_86 = arith.constant 0.000000e+00 : f32
    %304 = vector.broadcast %cst_86 : f32 to vector<16x128xf32>
    %305 = arith.select %47, %303, %304 : vector<16x128xi1>, vector<16x128xf32>
    %306 = arith.addf %261, %305 : vector<16x128xf32>
    %307 = vector.broadcast %86 : f32 to vector<16x128xf32>
    %308 = arith.mulf %307, %192 : vector<16x128xf32>
    %309 = vector.broadcast %93 : f32 to vector<16x128xf32>
    %310 = arith.mulf %309, %194 : vector<16x128xf32>
    %311 = arith.addf %308, %310 : vector<16x128xf32>
    %312 = vector.broadcast %100 : f32 to vector<16x128xf32>
    %313 = arith.mulf %312, %196 : vector<16x128xf32>
    %314 = arith.addf %311, %313 : vector<16x128xf32>
    %315 = vector.broadcast %107 : f32 to vector<16x128xf32>
    %316 = arith.mulf %315, %186 : vector<16x128xf32>
    %317 = arith.addf %314, %316 : vector<16x128xf32>
    %318 = vector.broadcast %114 : f32 to vector<16x128xf32>
    %319 = arith.mulf %318, %198 : vector<16x128xf32>
    %320 = arith.addf %317, %319 : vector<16x128xf32>
    %321 = vector.broadcast %121 : f32 to vector<16x128xf32>
    %322 = arith.mulf %321, %200 : vector<16x128xf32>
    %323 = arith.addf %320, %322 : vector<16x128xf32>
    %324 = vector.broadcast %128 : f32 to vector<16x128xf32>
    %325 = arith.mulf %324, %202 : vector<16x128xf32>
    %326 = arith.addf %323, %325 : vector<16x128xf32>
    %327 = vector.broadcast %135 : f32 to vector<16x128xf32>
    %328 = arith.mulf %327, %207 : vector<16x128xf32>
    %329 = arith.addf %326, %328 : vector<16x128xf32>
    %330 = vector.broadcast %142 : f32 to vector<16x128xf32>
    %331 = arith.mulf %330, %209 : vector<16x128xf32>
    %332 = arith.addf %329, %331 : vector<16x128xf32>
    %333 = vector.broadcast %149 : f32 to vector<16x128xf32>
    %334 = arith.mulf %333, %211 : vector<16x128xf32>
    %335 = arith.addf %332, %334 : vector<16x128xf32>
    %336 = vector.broadcast %156 : f32 to vector<16x128xf32>
    %337 = arith.mulf %336, %187 : vector<16x128xf32>
    %338 = arith.addf %335, %337 : vector<16x128xf32>
    %339 = vector.broadcast %163 : f32 to vector<16x128xf32>
    %340 = arith.mulf %339, %213 : vector<16x128xf32>
    %341 = arith.addf %338, %340 : vector<16x128xf32>
    %342 = vector.broadcast %170 : f32 to vector<16x128xf32>
    %343 = arith.mulf %342, %215 : vector<16x128xf32>
    %344 = arith.addf %341, %343 : vector<16x128xf32>
    %345 = vector.broadcast %177 : f32 to vector<16x128xf32>
    %346 = arith.mulf %345, %217 : vector<16x128xf32>
    %347 = arith.addf %344, %346 : vector<16x128xf32>
    %c1_i32_87 = arith.constant 1 : i32
    %348 = tpu.dynamic_rotate %347 by %c1_i32_87 dim 1 : vector<16x128xf32>, i32 -> vector<16x128xf32>
    %cst_88 = arith.constant 0.000000e+00 : f32
    %349 = vector.broadcast %cst_88 : f32 to vector<16x128xf32>
    %350 = arith.select %56, %348, %349 : vector<16x128xi1>, vector<16x128xf32>
    %351 = arith.addf %306, %350 : vector<16x128xf32>
    %352 = vector.broadcast %87 : f32 to vector<16x128xf32>
    %353 = arith.mulf %352, %192 : vector<16x128xf32>
    %354 = vector.broadcast %94 : f32 to vector<16x128xf32>
    %355 = arith.mulf %354, %194 : vector<16x128xf32>
    %356 = arith.addf %353, %355 : vector<16x128xf32>
    %357 = vector.broadcast %101 : f32 to vector<16x128xf32>
    %358 = arith.mulf %357, %196 : vector<16x128xf32>
    %359 = arith.addf %356, %358 : vector<16x128xf32>
    %360 = vector.broadcast %108 : f32 to vector<16x128xf32>
    %361 = arith.mulf %360, %186 : vector<16x128xf32>
    %362 = arith.addf %359, %361 : vector<16x128xf32>
    %363 = vector.broadcast %115 : f32 to vector<16x128xf32>
    %364 = arith.mulf %363, %198 : vector<16x128xf32>
    %365 = arith.addf %362, %364 : vector<16x128xf32>
    %366 = vector.broadcast %122 : f32 to vector<16x128xf32>
    %367 = arith.mulf %366, %200 : vector<16x128xf32>
    %368 = arith.addf %365, %367 : vector<16x128xf32>
    %369 = vector.broadcast %129 : f32 to vector<16x128xf32>
    %370 = arith.mulf %369, %202 : vector<16x128xf32>
    %371 = arith.addf %368, %370 : vector<16x128xf32>
    %372 = vector.broadcast %136 : f32 to vector<16x128xf32>
    %373 = arith.mulf %372, %207 : vector<16x128xf32>
    %374 = arith.addf %371, %373 : vector<16x128xf32>
    %375 = vector.broadcast %143 : f32 to vector<16x128xf32>
    %376 = arith.mulf %375, %209 : vector<16x128xf32>
    %377 = arith.addf %374, %376 : vector<16x128xf32>
    %378 = vector.broadcast %150 : f32 to vector<16x128xf32>
    %379 = arith.mulf %378, %211 : vector<16x128xf32>
    %380 = arith.addf %377, %379 : vector<16x128xf32>
    %381 = vector.broadcast %157 : f32 to vector<16x128xf32>
    %382 = arith.mulf %381, %187 : vector<16x128xf32>
    %383 = arith.addf %380, %382 : vector<16x128xf32>
    %384 = vector.broadcast %164 : f32 to vector<16x128xf32>
    %385 = arith.mulf %384, %213 : vector<16x128xf32>
    %386 = arith.addf %383, %385 : vector<16x128xf32>
    %387 = vector.broadcast %171 : f32 to vector<16x128xf32>
    %388 = arith.mulf %387, %215 : vector<16x128xf32>
    %389 = arith.addf %386, %388 : vector<16x128xf32>
    %390 = vector.broadcast %178 : f32 to vector<16x128xf32>
    %391 = arith.mulf %390, %217 : vector<16x128xf32>
    %392 = arith.addf %389, %391 : vector<16x128xf32>
    %393 = arith.addf %351, %392 : vector<16x128xf32>
    %394 = vector.broadcast %88 : f32 to vector<16x128xf32>
    %395 = arith.mulf %394, %192 : vector<16x128xf32>
    %396 = vector.broadcast %95 : f32 to vector<16x128xf32>
    %397 = arith.mulf %396, %194 : vector<16x128xf32>
    %398 = arith.addf %395, %397 : vector<16x128xf32>
    %399 = vector.broadcast %102 : f32 to vector<16x128xf32>
    %400 = arith.mulf %399, %196 : vector<16x128xf32>
    %401 = arith.addf %398, %400 : vector<16x128xf32>
    %402 = vector.broadcast %109 : f32 to vector<16x128xf32>
    %403 = arith.mulf %402, %186 : vector<16x128xf32>
    %404 = arith.addf %401, %403 : vector<16x128xf32>
    %405 = vector.broadcast %116 : f32 to vector<16x128xf32>
    %406 = arith.mulf %405, %198 : vector<16x128xf32>
    %407 = arith.addf %404, %406 : vector<16x128xf32>
    %408 = vector.broadcast %123 : f32 to vector<16x128xf32>
    %409 = arith.mulf %408, %200 : vector<16x128xf32>
    %410 = arith.addf %407, %409 : vector<16x128xf32>
    %411 = vector.broadcast %130 : f32 to vector<16x128xf32>
    %412 = arith.mulf %411, %202 : vector<16x128xf32>
    %413 = arith.addf %410, %412 : vector<16x128xf32>
    %414 = vector.broadcast %137 : f32 to vector<16x128xf32>
    %415 = arith.mulf %414, %207 : vector<16x128xf32>
    %416 = arith.addf %413, %415 : vector<16x128xf32>
    %417 = vector.broadcast %144 : f32 to vector<16x128xf32>
    %418 = arith.mulf %417, %209 : vector<16x128xf32>
    %419 = arith.addf %416, %418 : vector<16x128xf32>
    %420 = vector.broadcast %151 : f32 to vector<16x128xf32>
    %421 = arith.mulf %420, %211 : vector<16x128xf32>
    %422 = arith.addf %419, %421 : vector<16x128xf32>
    %423 = vector.broadcast %158 : f32 to vector<16x128xf32>
    %424 = arith.mulf %423, %187 : vector<16x128xf32>
    %425 = arith.addf %422, %424 : vector<16x128xf32>
    %426 = vector.broadcast %165 : f32 to vector<16x128xf32>
    %427 = arith.mulf %426, %213 : vector<16x128xf32>
    %428 = arith.addf %425, %427 : vector<16x128xf32>
    %429 = vector.broadcast %172 : f32 to vector<16x128xf32>
    %430 = arith.mulf %429, %215 : vector<16x128xf32>
    %431 = arith.addf %428, %430 : vector<16x128xf32>
    %432 = vector.broadcast %179 : f32 to vector<16x128xf32>
    %433 = arith.mulf %432, %217 : vector<16x128xf32>
    %434 = arith.addf %431, %433 : vector<16x128xf32>
    %c127_i32 = arith.constant 127 : i32
    %435 = tpu.dynamic_rotate %434 by %c127_i32 dim 1 : vector<16x128xf32>, i32 -> vector<16x128xf32>
    %cst_89 = arith.constant 0.000000e+00 : f32
    %436 = vector.broadcast %cst_89 : f32 to vector<16x128xf32>
    %437 = arith.select %65, %435, %436 : vector<16x128xi1>, vector<16x128xf32>
    %438 = arith.addf %393, %437 : vector<16x128xf32>
    %439 = vector.broadcast %89 : f32 to vector<16x128xf32>
    %440 = arith.mulf %439, %192 : vector<16x128xf32>
    %441 = vector.broadcast %96 : f32 to vector<16x128xf32>
    %442 = arith.mulf %441, %194 : vector<16x128xf32>
    %443 = arith.addf %440, %442 : vector<16x128xf32>
    %444 = vector.broadcast %103 : f32 to vector<16x128xf32>
    %445 = arith.mulf %444, %196 : vector<16x128xf32>
    %446 = arith.addf %443, %445 : vector<16x128xf32>
    %447 = vector.broadcast %110 : f32 to vector<16x128xf32>
    %448 = arith.mulf %447, %186 : vector<16x128xf32>
    %449 = arith.addf %446, %448 : vector<16x128xf32>
    %450 = vector.broadcast %117 : f32 to vector<16x128xf32>
    %451 = arith.mulf %450, %198 : vector<16x128xf32>
    %452 = arith.addf %449, %451 : vector<16x128xf32>
    %453 = vector.broadcast %124 : f32 to vector<16x128xf32>
    %454 = arith.mulf %453, %200 : vector<16x128xf32>
    %455 = arith.addf %452, %454 : vector<16x128xf32>
    %456 = vector.broadcast %131 : f32 to vector<16x128xf32>
    %457 = arith.mulf %456, %202 : vector<16x128xf32>
    %458 = arith.addf %455, %457 : vector<16x128xf32>
    %459 = vector.broadcast %138 : f32 to vector<16x128xf32>
    %460 = arith.mulf %459, %207 : vector<16x128xf32>
    %461 = arith.addf %458, %460 : vector<16x128xf32>
    %462 = vector.broadcast %145 : f32 to vector<16x128xf32>
    %463 = arith.mulf %462, %209 : vector<16x128xf32>
    %464 = arith.addf %461, %463 : vector<16x128xf32>
    %465 = vector.broadcast %152 : f32 to vector<16x128xf32>
    %466 = arith.mulf %465, %211 : vector<16x128xf32>
    %467 = arith.addf %464, %466 : vector<16x128xf32>
    %468 = vector.broadcast %159 : f32 to vector<16x128xf32>
    %469 = arith.mulf %468, %187 : vector<16x128xf32>
    %470 = arith.addf %467, %469 : vector<16x128xf32>
    %471 = vector.broadcast %166 : f32 to vector<16x128xf32>
    %472 = arith.mulf %471, %213 : vector<16x128xf32>
    %473 = arith.addf %470, %472 : vector<16x128xf32>
    %474 = vector.broadcast %173 : f32 to vector<16x128xf32>
    %475 = arith.mulf %474, %215 : vector<16x128xf32>
    %476 = arith.addf %473, %475 : vector<16x128xf32>
    %477 = vector.broadcast %180 : f32 to vector<16x128xf32>
    %478 = arith.mulf %477, %217 : vector<16x128xf32>
    %479 = arith.addf %476, %478 : vector<16x128xf32>
    %c126_i32 = arith.constant 126 : i32
    %480 = tpu.dynamic_rotate %479 by %c126_i32 dim 1 : vector<16x128xf32>, i32 -> vector<16x128xf32>
    %cst_90 = arith.constant 0.000000e+00 : f32
    %481 = vector.broadcast %cst_90 : f32 to vector<16x128xf32>
    %482 = arith.select %74, %480, %481 : vector<16x128xi1>, vector<16x128xf32>
    %483 = arith.addf %438, %482 : vector<16x128xf32>
    %484 = vector.broadcast %90 : f32 to vector<16x128xf32>
    %485 = arith.mulf %484, %192 : vector<16x128xf32>
    %486 = vector.broadcast %97 : f32 to vector<16x128xf32>
    %487 = arith.mulf %486, %194 : vector<16x128xf32>
    %488 = arith.addf %485, %487 : vector<16x128xf32>
    %489 = vector.broadcast %104 : f32 to vector<16x128xf32>
    %490 = arith.mulf %489, %196 : vector<16x128xf32>
    %491 = arith.addf %488, %490 : vector<16x128xf32>
    %492 = vector.broadcast %111 : f32 to vector<16x128xf32>
    %493 = arith.mulf %492, %186 : vector<16x128xf32>
    %494 = arith.addf %491, %493 : vector<16x128xf32>
    %495 = vector.broadcast %118 : f32 to vector<16x128xf32>
    %496 = arith.mulf %495, %198 : vector<16x128xf32>
    %497 = arith.addf %494, %496 : vector<16x128xf32>
    %498 = vector.broadcast %125 : f32 to vector<16x128xf32>
    %499 = arith.mulf %498, %200 : vector<16x128xf32>
    %500 = arith.addf %497, %499 : vector<16x128xf32>
    %501 = vector.broadcast %132 : f32 to vector<16x128xf32>
    %502 = arith.mulf %501, %202 : vector<16x128xf32>
    %503 = arith.addf %500, %502 : vector<16x128xf32>
    %504 = vector.broadcast %139 : f32 to vector<16x128xf32>
    %505 = arith.mulf %504, %207 : vector<16x128xf32>
    %506 = arith.addf %503, %505 : vector<16x128xf32>
    %507 = vector.broadcast %146 : f32 to vector<16x128xf32>
    %508 = arith.mulf %507, %209 : vector<16x128xf32>
    %509 = arith.addf %506, %508 : vector<16x128xf32>
    %510 = vector.broadcast %153 : f32 to vector<16x128xf32>
    %511 = arith.mulf %510, %211 : vector<16x128xf32>
    %512 = arith.addf %509, %511 : vector<16x128xf32>
    %513 = vector.broadcast %160 : f32 to vector<16x128xf32>
    %514 = arith.mulf %513, %187 : vector<16x128xf32>
    %515 = arith.addf %512, %514 : vector<16x128xf32>
    %516 = vector.broadcast %167 : f32 to vector<16x128xf32>
    %517 = arith.mulf %516, %213 : vector<16x128xf32>
    %518 = arith.addf %515, %517 : vector<16x128xf32>
    %519 = vector.broadcast %174 : f32 to vector<16x128xf32>
    %520 = arith.mulf %519, %215 : vector<16x128xf32>
    %521 = arith.addf %518, %520 : vector<16x128xf32>
    %522 = vector.broadcast %181 : f32 to vector<16x128xf32>
    %523 = arith.mulf %522, %217 : vector<16x128xf32>
    %524 = arith.addf %521, %523 : vector<16x128xf32>
    %c125_i32 = arith.constant 125 : i32
    %525 = tpu.dynamic_rotate %524 by %c125_i32 dim 1 : vector<16x128xf32>, i32 -> vector<16x128xf32>
    %cst_91 = arith.constant 0.000000e+00 : f32
    %526 = vector.broadcast %cst_91 : f32 to vector<16x128xf32>
    %527 = arith.select %83, %525, %526 : vector<16x128xi1>, vector<16x128xf32>
    %528 = arith.addf %483, %527 : vector<16x128xf32>
    %c0_92 = arith.constant 0 : index
    %c0_93 = arith.constant 0 : index
    %c0_94 = arith.constant 0 : index
    %c0_95 = arith.constant 0 : index
    %529 = vector.load %arg3[%c0_92, %c0_93, %c0_94, %c0_95] : memref<1x3x16x128xf32, #tpu.memory_space<vmem>>, vector<1x1x16x128xf32>
    %530 = vector.shape_cast %529 : vector<1x1x16x128xf32> to vector<16x128xf32>
    %531 = vector.shape_cast %528 : vector<16x128xf32> to vector<1x1x16x128xf32>
    tpu.vector_store %arg3[%c0_92, %c0_93, %c0_94, %c0_95], %531 {strides = array<i32>} : memref<1x3x16x128xf32, #tpu.memory_space<vmem>>, vector<1x1x16x128xf32>,
    %cst_96 = arith.constant 0.000000e+00 : f32
    %532 = vector.broadcast %cst_96 : f32 to vector<16x128xf32>
    %533 = arith.cmpf oge, %528, %532 : vector<16x128xf32>
    %534 = arith.extui %533 : vector<16x128xi1> to vector<16x128xi32>
    %535 = arith.sitofp %534 : vector<16x128xi32> to vector<16x128xf32>
    %c0_97 = arith.constant 0 : index
    %c1_98 = arith.constant 1 : index
    %c0_99 = arith.constant 0 : index
    %c0_100 = arith.constant 0 : index
    %536 = vector.load %arg3[%c0_97, %c1_98, %c0_99, %c0_100] : memref<1x3x16x128xf32, #tpu.memory_space<vmem>>, vector<1x1x16x128xf32>
    %537 = vector.shape_cast %536 : vector<1x1x16x128xf32> to vector<16x128xf32>
    %538 = vector.shape_cast %535 : vector<16x128xf32> to vector<1x1x16x128xf32>
    tpu.vector_store %arg3[%c0_97, %c1_98, %c0_99, %c0_100], %538 {strides = array<i32>} : memref<1x3x16x128xf32, #tpu.memory_space<vmem>>, vector<1x1x16x128xf32>,
    %c0_101 = arith.constant 0 : index
    %c8_102 = arith.constant 8 : index
    %c0_103 = arith.constant 0 : index
    %539 = vector.load %arg4[%c0_101, %c8_102, %c0_103] : memref<2x27x128xf32, #tpu.memory_space<vmem>>, vector<1x16x128xf32>
    %540 = vector.shape_cast %539 : vector<1x16x128xf32> to vector<16x128xf32>
    %541 = vector.shape_cast %535 : vector<16x128xf32> to vector<1x16x128xf32>
    tpu.vector_store %arg4[%c0_101, %c8_102, %c0_103], %541 {strides = array<i32>} : memref<2x27x128xf32, #tpu.memory_space<vmem>>, vector<1x16x128xf32>,
    %c0_104 = arith.constant 0 : index
    %c7_105 = arith.constant 7 : index
    %c0_106 = arith.constant 0 : index
    %542 = vector.load %arg4[%c0_104, %c7_105, %c0_106] : memref<2x27x128xf32, #tpu.memory_space<vmem>>, vector<1x16x128xf32>
    %543 = vector.shape_cast %542 : vector<1x16x128xf32> to vector<16x128xf32>
    %544 = arith.addf %543, %535 : vector<16x128xf32>
    %c0_107 = arith.constant 0 : index
    %c9_108 = arith.constant 9 : index
    %c0_109 = arith.constant 0 : index
    %545 = vector.load %arg4[%c0_107, %c9_108, %c0_109] : memref<2x27x128xf32, #tpu.memory_space<vmem>>, vector<1x16x128xf32>
    %546 = vector.shape_cast %545 : vector<1x16x128xf32> to vector<16x128xf32>
    %547 = arith.addf %544, %546 : vector<16x128xf32>
    %c1_i32_110 = arith.constant 1 : i32
    %548 = tpu.dynamic_rotate %547 by %c1_i32_110 dim 1 : vector<16x128xf32>, i32 -> vector<16x128xf32>
    %cst_111 = arith.constant 0.000000e+00 : f32
    %549 = vector.broadcast %cst_111 : f32 to vector<16x128xf32>
    %550 = arith.select %56, %548, %549 : vector<16x128xi1>, vector<16x128xf32>
    %551 = arith.addf %547, %550 : vector<16x128xf32>
    %c127_i32_112 = arith.constant 127 : i32
    %552 = tpu.dynamic_rotate %547 by %c127_i32_112 dim 1 : vector<16x128xf32>, i32 -> vector<16x128xf32>
    %cst_113 = arith.constant 0.000000e+00 : f32
    %553 = vector.broadcast %cst_113 : f32 to vector<16x128xf32>
    %554 = arith.select %65, %552, %553 : vector<16x128xi1>, vector<16x128xf32>
    %555 = arith.addf %551, %554 : vector<16x128xf32>
    %cst_114 = arith.constant 5.000000e-01 : f32
    %556 = vector.broadcast %cst_114 : f32 to vector<16x128xf32>
    %557 = arith.cmpf ogt, %555, %556 : vector<16x128xf32>
    %558 = arith.extui %557 : vector<16x128xi1> to vector<16x128xi32>
    %559 = arith.sitofp %558 : vector<16x128xi32> to vector<16x128xf32>
    %c0_115 = arith.constant 0 : index
    %c2_116 = arith.constant 2 : index
    %c0_117 = arith.constant 0 : index
    %c0_118 = arith.constant 0 : index
    %560 = vector.load %arg3[%c0_115, %c2_116, %c0_117, %c0_118] : memref<1x3x16x128xf32, #tpu.memory_space<vmem>>, vector<1x1x16x128xf32>
    %561 = vector.shape_cast %560 : vector<1x1x16x128xf32> to vector<16x128xf32>
    %562 = vector.shape_cast %559 : vector<16x128xf32> to vector<1x1x16x128xf32>
    tpu.vector_store %arg3[%c0_115, %c2_116, %c0_117, %c0_118], %562 {strides = array<i32>} : memref<1x3x16x128xf32, #tpu.memory_space<vmem>>, vector<1x1x16x128xf32>,
    return
  }
  func.func @transform_0(%arg0: i32) -> i32 {
    %c0_i32 = arith.constant 0 : i32
    %c0_i32_0 = arith.constant 0 : i32
    return %c0_i32 : i32
  }
  func.func @transform_1(%arg0: i32) -> (i32, i32, i32, i32) {
    %c0_i32 = arith.constant 0 : i32
    %c0_i32_0 = arith.constant 0 : i32
    %c0_i32_1 = arith.constant 0 : i32
    %c0_i32_2 = arith.constant 0 : i32
    return %arg0, %c0_i32, %c0_i32_0, %c0_i32_1 : i32, i32, i32, i32
  }
  func.func @transform_2(%arg0: i32) -> (i32, i32, i32, i32) {
    %c0_i32 = arith.constant 0 : i32
    %c0_i32_0 = arith.constant 0 : i32
    %c0_i32_1 = arith.constant 0 : i32
    %c0_i32_2 = arith.constant 0 : i32
    return %arg0, %c0_i32, %c0_i32_0, %c0_i32_1 : i32, i32, i32, i32
  }
}

</mosaic_0001>

<bundles_post_ra>
// kernel: tpu_custom_call.1
= control target key start
LH: loop header
LB: loop body
LE: loop exit
PB: predicated region body
PF: predicated region fallthrough
CT: control target
= control target key end

     0   :  { %7 = vsyncpa [#allocation6], 0  ;;  %s1912_s0 = inlined_call_operand.hbm [shape: f32[98], index: 0, kind: input, shape index: {}]   ;;  %s1913_s1 = inlined_call_operand.hbm [shape: f32[1,4,16,128], index: 1, kind: input, shape index: {}]   ;;  %s1914_s2 = inlined_call_operand.hbm [shape: f32[1,3,16,128], index: 2, kind: output, shape index: {}]  }
   0x1   :  { %8 = vsyncpa [#allocation4], 0 }
   0x2   :  { %9 = vsyncpa [#allocation5], 0  ;;  %s949_s11 = scalar_lea.hbm %s1912_s0, 16 }
   0x3   :  { %p950_p0 = scmp.ne.s32.totalorder %s1912_s0, %s949_s11  ;;  %p953_p1 = scmp.lt.u32.totalorder %s949_s11, %s1912_s0 }
   0x5   :  { %p955_p2 = pnand %p953_p1, %p950_p0 }
   0x7   :  { %958 = shalt.err (!%p955_p2)
}
   0x8   :  { %s1009_s16 = smov [#allocation3]   ;;  %s1010_s19 = smov [#allocation7]  }
   0x9   :  { %17 = dma.hbm_to_smem %s1912_s0, 16, %s1009_s16, [#allocation6]  }
   0xa   :  { %s23_s20 = sshll.u32 %s1010_s19, 4  ;;  %s959_s23 = scalar_lea.hbm %s1913_s1, 1024  ;;  %s24_s20 = int_to_ptr.vmem [resolvable:$true] %s23_s20 }
   0xb   :  { %p960_p3 = scmp.ne.s32.totalorder %s1913_s1, %s959_s23  ;;  %p963_p4 = scmp.lt.u32.totalorder %s959_s23, %s1913_s1 }
   0xd   :  { %p965_p5 = pnand %p963_p4, %p960_p3 }
   0xf   :  { %968 = shalt.err (!%p965_p5)
}
  0x10   :  { %s969_s28 = scalar_lea.vmem %s24_s20, 1024  ;;  %p974_p7 = scmp.lt.s32.totalorder %s24_s20, %s24_s20 }
  0x11   :  { %p970_p6 = scmp.ne.s32.totalorder %s24_s20, %s969_s28  ;;  %p975_p8 = scmp.lt.s32.totalorder %s969_s28, %s969_s28 }
  0x13   :  { %p976_p9 = por %p975_p8, %p974_p7 }
  0x15   :  { %p977_p10 = pnand %p976_p9, %p970_p6 }
  0x17   :  { %980 = shalt.err (!%p977_p10)
}
  0x18   :  { %s1011_s0 = smov 128   ;;  %s1012_s29 = smov 8  }
  0x19   :  { %29 = dma.hbm_to_vmem [thread:$0]  %s1913_s1, 1024, %s24_s20, [#allocation4], %s1011_s0, %s1011_s0, %s1012_s29  }
  0x1a   :  { %1003 = dma.done.wait [#allocation6], 16  }
  0x1b   :  { %1004 = vsyncadd [#allocation6], 4294967280 }
  0x1c   :  { %1005 = dma.done.wait [#allocation4], 1024  }
  0x1d   :  { %1006 = vsyncadd [#allocation4], 4294966272 }
  0x1e   :  { %36 = sfence }
  0x1f   :  { %s1063_s4 = sld [smem:[#allocation3 + $0x1]]  ;;  %v178_v0 = vld [vmem:[#allocation7] sm:$0xff]  ;;  %v1915_v1 = vmov 0.0   ;;  %s1069_s5 = sld [smem:[#allocation3 + $0x8]]  ;;  %v179_v2 = vld [vmem:[#allocation7 + $0x8] sm:$0xff]  ;;  %v180_v3 = vld [vmem:[#allocation7 + $0x10] sm:$0xff] }
  0x20   :  { %37 = vst [vmem:[#allocation2 + $0x5] sm:$0x7] %v1915_v1  ;;  %38 = vst [vmem:[#allocation2 + $0x18] sm:$0x7] %v1915_v1  ;;  %s1071_s1 = sld [smem:[#allocation3 + $0xf]]  ;;  %s1073_s6 = sld [smem:[#allocation3 + $0x16]]  ;;  %v186_v6 = vadd.f32 %v180_v3, %v178_v0 }
  0x21   :  { %40 = vst [vmem:[#allocation2 + $0x25] sm:$0x7] %v1915_v1  ;;  %41 = vst [vmem:[#allocation2 + $0x38] sm:$0x7] %v1915_v1  ;;  %s1075_s7 = sld [smem:[#allocation3 + $0x1d]]  ;;  %v181_v4 = vld [vmem:[#allocation7 + $0x18] sm:$0xff] }
  0x22   :  { %v182_v5 = vld [vmem:[#allocation7 + $0x20] sm:$0xff]  ;;  %s1077_s8 = sld [smem:[#allocation3 + $0x24]]  ;;  %s1079_s9 = sld [smem:[#allocation3 + $0x2b]]  ;;  %v183_v7 = vld [vmem:[#allocation7 + $0x28] sm:$0xff]  ;;  %v184_v8 = vld [vmem:[#allocation7 + $0x30] sm:$0xff]  ;;  %v189_v9 = vadd.f32 %v181_v4, %v179_v2 }
  0x23   :  { %v195_v10 = vmax.f32 %v178_v0, %v182_v5  ;;  %s1081_s10 = sld [smem:[#allocation3 + $0x32]]  ;;  %s1083_s11 = sld [smem:[#allocation3 + $0x39]]  ;;  %v185_v11 = vld [vmem:[#allocation7 + $0x38] sm:$0xff]  ;;  %v187_v12 = vadd.f32 %v186_v6, %v182_v5  ;;  %v196_v13 = vmax.f32 %v180_v3, %v184_v8  ;;  %v198_v14 = vmax.f32 %v179_v2, %v183_v7 }
  0x24   :  { %s1085_s12 = sld [smem:[#allocation3 + $0x40]]  ;;  %s1087_s13 = sld [smem:[#allocation3 + $0x47]]  ;;  %v190_v15 = vadd.f32 %v189_v9, %v183_v7  ;;  %v199_v16 = vmax.f32 %v181_v4, %v185_v11 }
  0x25   :  { %s1089_s14 = sld [smem:[#allocation3 + $0x4e]]  ;;  %s1091_s15 = sld [smem:[#allocation3 + $0x55]]  ;;  %v188_v17 = vadd.f32 %v187_v12, %v184_v8  ;;  %v1093_v18 = vmax.f32 %v195_v10, %v196_v13  ;;  %v303_v24 = vstv %s1063_s4  ;;  %v306_v25 = vstv %s1069_s5 }
  0x26   :  { %s1095_s16 = sld [smem:[#allocation3 + $0x5c]]  ;;  %v191_v19 = vadd.f32 %v190_v15, %v185_v11  ;;  %v1097_v20 = vmax.f32 %v198_v14, %v199_v16  ;;  %s1099_s17 = sld [smem:[#allocation3]]  ;;  %v316_v23 = vstv %s1073_s6  ;;  %v311_v27 = vstv %s1071_s1 }
  0x27   :  { %v1101_v21 = vmul.f32 0.25, %v188_v17  ;;  %215 = vst [vmem:[#allocation2 + $0x28] sm:$0xff] %v1093_v18  ;;  %s1104_s18 = sld [smem:[#allocation3 + $0x7]]  ;;  %s1106_s19 = sld [smem:[#allocation3 + $0xe]]  ;;  %v321_v28 = vstv %s1075_s7 }
  0x28   :  { %v1108_v22 = vmul.f32 0.25, %v191_v19  ;;  %216 = vst [vmem:[#allocation2 + $0x30] sm:$0xff] %v1097_v20  ;;  %s1111_s20 = sld [smem:[#allocation3 + $0x15]]  ;;  %s1113_s21 = sld [smem:[#allocation3 + $0x1c]]  ;;  %v326_v29 = vstv %s1077_s8  ;;  %v331_v30 = vstv %s1079_s9 }
  0x29   :  { %1936 = vst [vmem:[#allocation12_spill] sm:$0xff] %v1101_v21  ;;  %201 = vst [vmem:[#allocation2 + $0x8] sm:$0xff] %v1101_v21  ;;  %v1126_v31 = vmul.f32 %v316_v23, %v1101_v21  ;;  %v336_v32 = vstv %s1081_s10  ;;  %v341_v33 = vstv %s1083_s11  ;;  %s1166_s22 = sld [smem:[#allocation3 + $0x23]]  ;;  %s1183_s23 = sld [smem:[#allocation3 + $0x2a]] }
  0x2a   :  { %202 = vst [vmem:[#allocation2 + $0x10] sm:$0xff] %v1108_v22  ;;  %v351_v26 = vstv %s1087_s13  ;;  %v346_v34 = vstv %s1085_s12  ;;  %v1138_v38 = vmul.f32 %v316_v23, %v1108_v22  ;;  %s1210_s24 = sld [smem:[#allocation3 + $0x31]]  ;;  %s1227_s25 = sld [smem:[#allocation3 + $0x38]] }
  0x2b   :  { %v1141_v39 = vmul.f32 %v351_v26, %v1093_v18  ;;  %v1144_v40 = vmul.f32 %v351_v26, %v1097_v20  ;;  %v356_v41 = vstv %s1089_s14  ;;  %v361_v45 = vstv %s1091_s15  ;;  %s1229_s26 = sld [smem:[#allocation3 + $0x3f]]  ;;  %s1248_s27 = sld [smem:[#allocation3 + $0x46]] }
  0x2c   :  { %v229_v47 = vstv %s1099_s17  ;;  %s1267_s28 = sld [smem:[#allocation3 + $0x4d]]  ;;  %s1269_s30 = sld [smem:[#allocation3 + $0x54]] }
  0x2d   :  { %v1917_v53 = vstv %s1104_s18  ;;  %v1918_v54 = vstv %s1106_s19  ;;  %s1300_s3 = sld [smem:[#allocation3 + $0x5b]]  ;;  %s1322_s4 = sld [smem:[#allocation3 + $0x2]] }
  0x2e   :  { %v1131_v35 = vld [vmem:[#allocation2 + $0x25] sm:$0xff]  ;;  %v242_v48 = vstv %s1111_s20  ;;  %v247_v55 = vstv %s1113_s21  ;;  %s1324_s5 = sld [smem:[#allocation3 + $0x9]]  ;;  %s1336_s1 = sld [smem:[#allocation3 + $0x10]] }
  0x2f   :  { %v1133_v36 = vld [vmem:[#allocation2 + $0x26] sm:$0xff]  ;;  %v1149_v43 = vld [vmem:[#allocation2 + $0x2e] sm:$0xff]  ;;  %v1164_v52 = vmul.f32 %v336_v32, %v1131_v35  ;;  %v243_v6 = vmul.f32 %v242_v48, %v1101_v21  ;;  %v1214_v13 = vmul.f32 %v242_v48, %v1108_v22  ;;  %s1338_s6 = sld [smem:[#allocation3 + $0x17]]  ;;  %s1348_s7 = sld [smem:[#allocation3 + $0x1e]] }
  0x30   :  { %v1135_v37 = vld [vmem:[#allocation2 + $0x27] sm:$0xff]  ;;  %v1151_v44 = vld [vmem:[#allocation2 + $0x2f] sm:$0xff]  ;;  %v1181_v62 = vmul.f32 %v341_v33, %v1133_v36  ;;  %v1195_v4 = vmul.f32 %v341_v33, %v1149_v43  ;;  %s1368_s8 = sld [smem:[#allocation3 + $0x25]]  ;;  %s1370_s9 = sld [smem:[#allocation3 + $0x2c]] }
  0x31   :  { %v1147_v42 = vld [vmem:[#allocation2 + $0x2d] sm:$0xff]  ;;  %v1157_v49 = vld [vmem:[#allocation2 + $0x5] sm:$0xff]  ;;  %v1198_v5 = vmul.f32 %v346_v34, %v1135_v37  ;;  %v1208_v11 = vmul.f32 %v346_v34, %v1151_v44  ;;  %s1378_s10 = sld [smem:[#allocation3 + $0x33]]  ;;  %s1390_s11 = sld [smem:[#allocation3 + $0x3a]] }
  0x32   :  { %v1159_v50 = vld [vmem:[#allocation2 + $0x6] sm:$0xff]  ;;  %v1173_v57 = vld [vmem:[#allocation2 + $0xe] sm:$0xff]  ;;  %v304_v59 = vmul.f32 %v303_v24, %v1157_v49  ;;  %v1192_v3 = vmul.f32 %v336_v32, %v1147_v42  ;;  %v230_v12 = vmul.f32 %v229_v47, %v1157_v49  ;;  %s1395_s12 = sld [smem:[#allocation3 + $0x41]]  ;;  %s1411_s13 = sld [smem:[#allocation3 + $0x48]] }
  0x33   :  { %v1161_v51 = vld [vmem:[#allocation2 + $0x7] sm:$0xff]  ;;  %v1175_v58 = vld [vmem:[#allocation2 + $0xf] sm:$0xff]  ;;  %v307_v60 = vmul.f32 %v306_v25, %v1159_v50  ;;  %v1222_v16 = vmul.f32 %v306_v25, %v1173_v57  ;;  %v233_v19 = vmul.f32 %v1917_v53, %v1159_v50  ;;  %s1416_s14 = sld [smem:[#allocation3 + $0x4f]]  ;;  %s1418_s15 = sld [smem:[#allocation3 + $0x56]] }
  0x34   :  { %v1171_v56 = vld [vmem:[#allocation2 + $0xd] sm:$0xff]  ;;  %v312_v61 = vmul.f32 %v311_v27, %v1161_v51  ;;  %v1225_v17 = vmul.f32 %v311_v27, %v1175_v58  ;;  %s1014_s17 = smov 2   ;;  %s1473_s20 = sld [smem:[#allocation3 + $0xb]] }
  0x35   :  { %v1185_v63 = vld [vmem:[#allocation2 + $0x9] sm:$0xff]  ;;  %v1187_v0 = vld [vmem:[#allocation2 + $0x11] sm:$0xff]  ;;  %v309_v10 = vadd.f32 %v307_v60, %v304_v59  ;;  %v1219_v15 = vmul.f32 %v303_v24, %v1171_v56  ;;  %v231_v33 = vmul.f32 %v229_v47, %v1171_v56  ;;  %s1475_s21 = sld [smem:[#allocation3 + $0x12]] }
  0x36   :  { %1937 = vst [vmem:[#allocation13_spill] sm:$0xff] %v1185_v63  ;;  %v1189_v2 = vld [vmem:[#allocation2 + $0xa] sm:$0xff]  ;;  %v1201_v7 = vld [vmem:[#allocation2 + $0x12] sm:$0xff]  ;;  %v322_v27 = vmul.f32 %v321_v28, %v1185_v63  ;;  %v1246_v32 = vmul.f32 %v321_v28, %v1187_v0 }
  0x37   :  { %1938 = vst [vmem:[#allocation14_spill] sm:$0xff] %v1189_v2  ;;  %v1203_v8 = vld [vmem:[#allocation2 + $0xb] sm:$0xff]  ;;  %v1205_v9 = vld [vmem:[#allocation2 + $0x13] sm:$0xff]  ;;  %v314_v25 = vadd.f32 %v312_v61, %v309_v10  ;;  %v327_v34 = vmul.f32 %v326_v29, %v1189_v2  ;;  %v1257_v48 = vmul.f32 %v326_v29, %v1201_v7  ;;  %v235_v61 = vadd.f32 %v233_v19, %v230_v12 }
  0x38   :  { %1939 = vst [vmem:[#allocation15_spill] sm:$0xff] %v1203_v8  ;;  %v1216_v14 = vld [vmem:[#allocation2 + $0x29] sm:$0xff]  ;;  %v1234_v23 = vld [vmem:[#allocation2 + $0x31] sm:$0xff]  ;;  %v332_v59 = vmul.f32 %v331_v30, %v1203_v8  ;;  %v1265_v28 = vmul.f32 %v331_v30, %v1205_v9  ;;  %v238_v10 = vmul.f32 %v1918_v54, %v1161_v51  ;;  %v257_v19 = vstv %s1183_s23  ;;  %s1493_s23 = sld [smem:[#allocation3 + $0x20]] }
  0x39   :  { %1940 = vst [vmem:[#allocation16_spill] sm:$0xff] %v1216_v14  ;;  %v1236_v26 = vld [vmem:[#allocation2 + $0x2a] sm:$0xff]  ;;  %v1238_v24 = vld [vmem:[#allocation2 + $0x32] sm:$0xff]  ;;  %v319_v29 = vadd.f32 %v1126_v31, %v314_v25  ;;  %v1279_v30 = vmul.f32 %v356_v41, %v1216_v14  ;;  %v1287_v1 = vmul.f32 %v356_v41, %v1234_v23  ;;  %v252_v25 = vstv %s1166_s22  ;;  %s1491_s22 = sld [smem:[#allocation3 + $0x19]] }
  0x3a   :  { %1941 = vst [vmem:[#allocation17_spill] sm:$0xff] %v1238_v24  ;;  %v1271_v47 = vld [vmem:[#allocation2 + $0x2b] sm:$0xff]  ;;  %v1273_v60 = vld [vmem:[#allocation2 + $0x33] sm:$0xff]  ;;  %v1292_v53 = vmul.f32 %v361_v45, %v1236_v26  ;;  %v1297_v31 = vmul.f32 %v361_v45, %v1238_v24  ;;  %v240_v12 = vadd.f32 %v238_v10, %v235_v61  ;;  %v248_v41 = vmul.f32 %v247_v55, %v1185_v63 }
  0x3b   :  { %1942 = vst [vmem:[#allocation18_spill] sm:$0xff] %v1273_v60  ;;  %1943 = vst [vmem:[#allocation19_spill] sm:$0xff] %v1287_v1  ;;  %v324_v46 = vadd.f32 %v322_v27, %v319_v29  ;;  %v1945_v54 = vstv %s1095_s16  ;;  %v1949_v27 = vstv %s1106_s19  ;;  %v253_v10 = vmul.f32 %v252_v25, %v1189_v2  ;;  %s1430_s16 = sld [smem:[#allocation3 + $0x5d]]  ;;  %s1015_s19 = smov 3  }
  0x3c   :  { %1944 = vst [vmem:[#allocation20_spill] sm:$0xff] %v1297_v31  ;;  %v1309_v21 = vmul.f32 %v1945_v54, %v1271_v47  ;;  %v1946_v1 = vmov %v1945_v54  ;;  %v1948_v31 = vstv %s1104_s18  ;;  %v239_v29 = vmul.f32 %v1949_v27, %v1175_v58  ;;  %s1465_s18 = sld [smem:[#allocation3 + $0x4]] }
  0x3d   :  { %v1314_v45 = vmul.f32 %v1946_v1, %v1273_v60  ;;  %v234_v24 = vmul.f32 %v1948_v31, %v1173_v57  ;;  %v329_v61 = vadd.f32 %v327_v34, %v324_v46  ;;  %v245_v54 = vadd.f32 %v243_v6, %v240_v12 }
  0x3e   :  { %v262_v1 = vstv %s1210_s24  ;;  %v1332_v31 = vmul.f32 %v252_v25, %v1201_v7  ;;  %v258_v27 = vmul.f32 %v257_v19, %v1203_v8  ;;  %v1933_v34 = vstv %s1229_s26  ;;  %s1508_s24 = sld [smem:[#allocation3 + $0x27]] }
  0x3f   :  { %1947 = vst [vmem:[#allocation21_spill] sm:$0xff] %v1314_v45  ;;  %v249_v45 = vmul.f32 %v247_v55, %v1187_v0  ;;  %v334_v46 = vadd.f32 %v332_v59, %v329_v61  ;;  %v250_v6 = vadd.f32 %v248_v41, %v245_v54  ;;  %v1931_v12 = vstv %s1248_s27 }
  0x40   :  { %v1343_v55 = vmul.f32 %v257_v19, %v1205_v9  ;;  %v263_v25 = vmul.f32 %v262_v1, %v1131_v35  ;;  %v1932_v8 = vstv %s1267_s28  ;;  %v1352_v59 = vmul.f32 %v262_v1, %v1147_v42 }
  0x41   :  { %v339_v2 = vadd.f32 %v1164_v52, %v334_v46  ;;  %v255_v60 = vadd.f32 %v253_v10, %v250_v6  ;;  %v1950_v41 = vstv %s1227_s25  ;;  %v273_v61 = vmul.f32 %v1933_v34, %v1135_v37 }
  0x42   :  { %v268_v19 = vmul.f32 %v1950_v41, %v1133_v36  ;;  %v278_v54 = vmul.f32 %v1931_v12, %v1093_v18  ;;  %v283_v63 = vmul.f32 %v1932_v8, %v1216_v14  ;;  %v310_v52 = vadd.f32 %v1222_v16, %v1219_v15 }
  0x43   :  { %v344_v10 = vadd.f32 %v1181_v62, %v339_v2  ;;  %v260_v1 = vadd.f32 %v258_v27, %v255_v60  ;;  %v1951_v46 = vstv %s1269_s30  ;;  %v292_v41 = vstv %s1300_s3  ;;  %s1541_s3 = sld [smem:[#allocation3 + $0x51]] }
  0x44   :  { %v288_v6 = vmul.f32 %v1951_v46, %v1236_v26  ;;  %v315_v12 = vadd.f32 %v1225_v17, %v310_v52  ;;  %v236_v8 = vadd.f32 %v234_v24, %v231_v33  ;;  %v379_v15 = vstv %s1322_s4  ;;  %s1553_s4 = sld [smem:[#allocation3 + $0x58]] }
  0x45   :  { %v382_v16 = vstv %s1324_s5  ;;  %v349_v34 = vadd.f32 %v1198_v5, %v344_v10  ;;  %v265_v14 = vadd.f32 %v263_v25, %v260_v1  ;;  %v381_v62 = vmul.f32 %v379_v15, %v1171_v56  ;;  %s1559_s5 = sld [smem:[#allocation3 + $0x5f]] }
  0x46   :  { %v384_v2 = vmul.f32 %v382_v16, %v1173_v57  ;;  %v320_v60 = vadd.f32 %v1138_v38, %v315_v12  ;;  %v241_v17 = vadd.f32 %v239_v29, %v236_v8  ;;  %v387_v24 = vstv %s1336_s1  ;;  %s1016_s1 = smov 1  }
  0x47   :  { %v392_v33 = vstv %s1338_s6  ;;  %v354_v27 = vadd.f32 %v1141_v39, %v349_v34  ;;  %v270_v5 = vadd.f32 %v268_v19, %v265_v14  ;;  %v389_v52 = vmul.f32 %v387_v24, %v1175_v58  ;;  %s1575_s6 = sld [smem:[#allocation3 + $0x5]] }
  0x48   :  { %v386_v25 = vadd.f32 %v384_v2, %v381_v62  ;;  %v325_v10 = vadd.f32 %v1246_v32, %v320_v60  ;;  %v246_v38 = vadd.f32 %v1214_v13, %v241_v17  ;;  %v394_v8 = vmul.f32 %v392_v33, %v1108_v22 }
  0x49   :  { %v397_v29 = vstv %s1348_s7  ;;  %v359_v39 = vadd.f32 %v1279_v30, %v354_v27  ;;  %v275_v14 = vadd.f32 %v273_v61, %v270_v5  ;;  %v402_v13 = vstv %s1368_s8  ;;  %s1577_s7 = sld [smem:[#allocation3 + $0xc]]  ;;  %s1585_s8 = sld [smem:[#allocation3 + $0x13]] }
  0x4a   :  { %v391_v34 = vadd.f32 %v389_v52, %v386_v25  ;;  %v399_v12 = vmul.f32 %v397_v29, %v1187_v0  ;;  %v330_v19 = vadd.f32 %v1257_v48, %v325_v10  ;;  %v251_v1 = vadd.f32 %v249_v45, %v246_v38 }
  0x4b   :  { %v407_v32 = vstv %s1370_s9  ;;  %v364_v46 = vadd.f32 %v1292_v53, %v359_v39  ;;  %v280_v62 = vadd.f32 %v278_v54, %v275_v14  ;;  %v404_v61 = vmul.f32 %v402_v13, %v1201_v7  ;;  %s1589_s9 = sld [smem:[#allocation3 + $0x1a]] }
  0x4c   :  { %v396_v30 = vadd.f32 %v394_v8, %v391_v34  ;;  %v293_v48 = vmul.f32 %v292_v41, %v1271_v47  ;;  %v335_v45 = vadd.f32 %v1265_v28, %v330_v19  ;;  %v256_v2 = vadd.f32 %v1332_v31, %v251_v1 }
  0x4d   :  { %v412_v53 = vstv %s1378_s10  ;;  %v369_v54 = vadd.f32 %v1309_v21, %v364_v46  ;;  %v285_v60 = vadd.f32 %v283_v63, %v280_v62  ;;  %v409_v27 = vmul.f32 %v407_v32, %v1205_v9  ;;  %s1595_s10 = sld [smem:[#allocation3 + $0x21]] }
  0x4e   :  { %v401_v17 = vadd.f32 %v399_v12, %v396_v30  ;;  %v1952_v5 = vstv %s1227_s25  ;;  %v340_v25 = vadd.f32 %v1192_v3, %v335_v45  ;;  %v261_v31 = vadd.f32 %v1343_v55, %v256_v2  ;;  %s1523_s25 = sld [smem:[#allocation3 + $0x2e]] }
  0x4f   :  { %v269_v28 = vmul.f32 %v1952_v5, %v1149_v43  ;;  %v417_v52 = vstv %s1390_s11  ;;  %371 = vrot.lane.b32.xlu1 %v369_v54, %s1014_s17  ;;  %v290_v21 = vadd.f32 %v288_v6, %v285_v60  ;;  %v414_v10 = vmul.f32 %v412_v53, %v1147_v42  ;;  %s1603_s11 = sld [smem:[#allocation3 + $0x28]] }
  0x50   :  { %v406_v63 = vadd.f32 %v404_v61, %v401_v17  ;;  %v422_v38 = vstv %s1395_s12  ;;  %v1953_v8 = vstv %s1229_s26  ;;  %v1954_v3 = vstv %s1248_s27  ;;  %s1526_s26 = sld [smem:[#allocation3 + $0x35]]  ;;  %s1529_s27 = sld [smem:[#allocation3 + $0x3c]] }
  0x51   :  { %v274_v39 = vmul.f32 %v1953_v8, %v1151_v44  ;;  %v279_v14 = vmul.f32 %v1954_v3, %v1097_v20  ;;  %v345_v55 = vadd.f32 %v1195_v4, %v340_v25  ;;  %v266_v34 = vadd.f32 %v1352_v59, %v261_v31  ;;  %v1960_v8 = vld [vmem:[#allocation18_spill] sm:$0xff]  ;;  %s1614_s12 = sld [smem:[#allocation3 + $0x2f]] }
  0x52   :  { %v1955_v6 = vstv %s1267_s28  ;;  %v295_v19 = vadd.f32 %v293_v48, %v290_v21  ;;  %v411_v1 = vadd.f32 %v409_v27, %v406_v63  ;;  %v419_v46 = vmul.f32 %v417_v52, %v1149_v43  ;;  %v1956_v27 = vld [vmem:[#allocation17_spill] sm:$0xff]  ;;  %v1959_v63 = vld [vmem:[#allocation12_spill] sm:$0xff]  ;;  %s1531_s28 = sld [smem:[#allocation3 + $0x43]] }
  0x53   :  { %v284_v12 = vmul.f32 %v1955_v6, %v1234_v23  ;;  %v350_v62 = vadd.f32 %v1208_v11, %v345_v55  ;;  %v271_v30 = vadd.f32 %v269_v28, %v266_v34  ;;  %v424_v4 = vmul.f32 %v422_v38, %v1151_v44  ;;  %v1961_v6 = vld [vmem:[#allocation20_spill] sm:$0xff] }
  0x54   :  { %v427_v61 = vstv %s1411_s13  ;;  %297 = vrot.lane.b32.xlu0 %v295_v19, %s1015_s19  ;;  %v416_v59 = vadd.f32 %v414_v10, %v411_v1  ;;  %v432_v48 = vstv %s1416_s14  ;;  %v437_v45 = vstv %s1418_s15  ;;  %s1619_s13 = sld [smem:[#allocation3 + $0x36]]  ;;  %s1626_s14 = sld [smem:[#allocation3 + $0x3d]] }
  0x55   :  { %v380_v11 = vmul.f32 %v379_v15, %v1157_v49  ;;  %v355_v2 = vadd.f32 %v1144_v40, %v350_v62  ;;  %v276_v54 = vadd.f32 %v274_v39, %v271_v30  ;;  %v383_v60 = vmul.f32 %v382_v16, %v1159_v50  ;;  %v1958_v40 = vld [vmem:[#allocation19_spill] sm:$0xff]  ;;  %v1963_v30 = vld [vmem:[#allocation14_spill] sm:$0xff]  ;;  %s1628_s15 = sld [smem:[#allocation3 + $0x44]] }
  0x56   :  { %v388_v17 = vmul.f32 %v387_v24, %v1161_v51  ;;  %v1957_v5 = vstv %s1269_s30  ;;  %v421_v28 = vadd.f32 %v419_v46, %v416_v59  ;;  %v429_v25 = vmul.f32 %v427_v61, %v1097_v20  ;;  %v1962_v46 = vld [vmem:[#allocation13_spill] sm:$0xff]  ;;  %v1964_v59 = vld [vmem:[#allocation15_spill] sm:$0xff]  ;;  %s1537_s30 = sld [smem:[#allocation3 + $0x4a]] }
  0x57   :  { %v289_v15 = vmul.f32 %v1957_v5, %v1956_v27  ;;  %v442_v31 = vstv %s1430_s16  ;;  %v360_v16 = vadd.f32 %v1958_v40, %v355_v2  ;;  %v281_v21 = vadd.f32 %v279_v14, %v276_v54  ;;  %v1965_v2 = vld [vmem:[#allocation21_spill] sm:$0xff]  ;;  %s1632_s16 = sld [smem:[#allocation3 + $0x4b]] }
  0x58   :  { %v385_v24 = vadd.f32 %v383_v60, %v380_v11  ;;  %v393_v10 = vmul.f32 %v392_v33, %v1959_v63  ;;  %v294_v39 = vmul.f32 %v292_v41, %v1960_v8  ;;  %v426_v3 = vadd.f32 %v424_v4, %v421_v28 }
  0x59   :  { %v434_v55 = vmul.f32 %v432_v48, %v1234_v23  ;;  %v439_v34 = vmul.f32 %v437_v45, %v1956_v27  ;;  %v365_v19 = vadd.f32 %v1961_v6, %v360_v16  ;;  %v286_v14 = vadd.f32 %v284_v12, %v281_v21 }
  0x5a   :  { %v390_v1 = vadd.f32 %v388_v17, %v385_v24  ;;  %v398_v33 = vmul.f32 %v397_v29, %v1962_v46  ;;  %v431_v41 = vadd.f32 %v429_v25, %v426_v3  ;;  %v444_v62 = vmul.f32 %v442_v31, %v1960_v8 }
  0x5b   :  { %v403_v4 = vmul.f32 %v402_v13, %v1963_v30  ;;  %v408_v11 = vmul.f32 %v407_v32, %v1964_v59  ;;  %v370_v12 = vadd.f32 %v1965_v2, %v365_v19  ;;  %v291_v54 = vadd.f32 %v289_v15, %v286_v14 }
  0x5c   :  { %v395_v60 = vadd.f32 %v393_v10, %v390_v1  ;;  %v525_v29 = vstv %s1465_s18  ;;  %v436_v17 = vadd.f32 %v434_v55, %v431_v41  ;;  %v528_v32 = vstv %s1473_s20  ;;  %v1966_v41 = vld [vmem:[#allocation16_spill] sm:$0xff]  ;;  %s1641_s18 = sld [smem:[#allocation3 + $0x59]]  ;;  %s1673_s20 = sld [smem:[#allocation3 + $0x6]] }
  0x5d   :  { %v527_v13 = vmul.f32 %v525_v29, %v1171_v56  ;;  %v533_v5 = vstv %s1475_s21  ;;  %373 = vrot.lane.b32.xlu1 %v370_v12, %s1014_s17  ;;  %v296_v15 = vadd.f32 %v294_v39, %v291_v54  ;;  %v530_v25 = vmul.f32 %v528_v32, %v1173_v57  ;;  %s1634_s17 = sld [smem:[#allocation3 + $0x52]]  ;;  %s1680_s21 = sld [smem:[#allocation3 + $0xd]] }
  0x5e   :  { %v400_v28 = vadd.f32 %v398_v33, %v395_v60  ;;  %v535_v40 = vmul.f32 %v533_v5, %v1175_v58  ;;  %v441_v16 = vadd.f32 %v439_v34, %v436_v17  ;;  %v538_v21 = vstv %s1491_s22  ;;  %s1682_s22 = sld [smem:[#allocation3 + $0x14]] }
  0x5f   :  { %v543_v24 = vstv %s1493_s23  ;;  %299 = vrot.lane.b32.xlu0 %v296_v15, %s1015_s19  ;;  %v413_v39 = vmul.f32 %v412_v53, %v1131_v35  ;;  %v532_v3 = vadd.f32 %v530_v25, %v527_v13  ;;  %v540_v55 = vmul.f32 %v538_v21, %v1108_v22  ;;  %s1667_s19 = sld [smem:[#allocation3 + $0x60]]  ;;  %s1689_s23 = sld [smem:[#allocation3 + $0x1b]] }
  0x60   :  { %v405_v10 = vadd.f32 %v403_v4, %v400_v28  ;;  %v446_v6 = vadd.f32 %v444_v62, %v441_v16  ;;  %v418_v34 = vmul.f32 %v417_v52, %v1133_v36  ;;  %v548_v19 = vstv %s1508_s24  ;;  %s1691_s24 = sld [smem:[#allocation3 + $0x22]] }
  0x61   :  { %v423_v1 = vmul.f32 %v422_v38, %v1135_v37  ;;  %v537_v53 = vadd.f32 %v535_v40, %v532_v3  ;;  %v545_v33 = vmul.f32 %v543_v24, %v1187_v0  ;;  %v428_v52 = vmul.f32 %v427_v61, %v1093_v18 }
  0x62   :  { %v410_v14 = vadd.f32 %v408_v11, %v405_v10  ;;  %449 = vrot.lane.b32.xlu1 %v446_v6, %s1016_s1  ;;  %v433_v62 = vmul.f32 %v432_v48, %v1966_v41  ;;  %v438_v38 = vmul.f32 %v437_v45, %v1236_v26  ;;  %v553_v4 = vstv %s1523_s25  ;;  %s1017_s25 = smov 127  }
  0x63   :  { %v542_v2 = vadd.f32 %v540_v55, %v537_v53  ;;  %v550_v12 = vmul.f32 %v548_v19, %v1201_v7  ;;  %v558_v54 = vstv %s1526_s26  ;;  %v443_v61 = vmul.f32 %v442_v31, %v1271_v47  ;;  %s1705_s26 = sld [smem:[#allocation3 + $0x29]] }
  0x64   :  { %v415_v11 = vadd.f32 %v413_v39, %v410_v14  ;;  %v563_v60 = vstv %s1529_s27  ;;  %v568_v48 = vstv %s1531_s28  ;;  %v526_v45 = vmul.f32 %v525_v29, %v1157_v49  ;;  %s1720_s27 = sld [smem:[#allocation3 + $0x30]]  ;;  %s1726_s28 = sld [smem:[#allocation3 + $0x37]] }
  0x65   :  { %v547_v13 = vadd.f32 %v545_v33, %v542_v2  ;;  %v555_v15 = vmul.f32 %v553_v4, %v1205_v9  ;;  %v573_v28 = vstv %s1537_s30  ;;  %v560_v25 = vmul.f32 %v558_v54, %v1147_v42  ;;  %s1736_s30 = sld [smem:[#allocation3 + $0x3e]] }
  0x66   :  { %v420_v17 = vadd.f32 %v418_v34, %v415_v11  ;;  %v578_v31 = vstv %s1541_s3  ;;  %v529_v40 = vmul.f32 %v528_v32, %v1159_v50  ;;  %v534_v29 = vmul.f32 %v533_v5, %v1161_v51  ;;  %s1744_s3 = sld [smem:[#allocation3 + $0x45]] }
  0x67   :  { %v552_v10 = vadd.f32 %v550_v12, %v547_v13  ;;  %v565_v39 = vmul.f32 %v563_v60, %v1149_v43  ;;  %v570_v3 = vmul.f32 %v568_v48, %v1151_v44  ;;  %v575_v55 = vmul.f32 %v573_v28, %v1097_v20 }
  0x68   :  { %v425_v16 = vadd.f32 %v423_v1, %v420_v17  ;;  %v583_v6 = vstv %s1553_s4  ;;  %v531_v32 = vadd.f32 %v529_v40, %v526_v45  ;;  %v539_v5 = vmul.f32 %v538_v21, %v1959_v63  ;;  %s1755_s4 = sld [smem:[#allocation3 + $0x4c]] }
  0x69   :  { %v557_v14 = vadd.f32 %v555_v15, %v552_v10  ;;  %v580_v1 = vmul.f32 %v578_v31, %v1234_v23  ;;  %v588_v53 = vstv %s1559_s5  ;;  %v544_v11 = vmul.f32 %v543_v24, %v1962_v46  ;;  %s1762_s5 = sld [smem:[#allocation3 + $0x53]] }
  0x6a   :  { %v430_v34 = vadd.f32 %v428_v52, %v425_v16  ;;  %v536_v33 = vadd.f32 %v534_v29, %v531_v32  ;;  %v549_v2 = vmul.f32 %v548_v19, %v1963_v30  ;;  %v554_v12 = vmul.f32 %v553_v4, %v1964_v59 }
  0x6b   :  { %v562_v52 = vadd.f32 %v560_v25, %v557_v14  ;;  %v601_v45 = vstv %s1575_s6  ;;  %v604_v17 = vstv %s1577_s7  ;;  %v609_v29 = vstv %s1585_s8  ;;  %s1769_s6 = sld [smem:[#allocation3 + $0x5a]]  ;;  %s1018_s7 = smov 126  }
  0x6c   :  { %v435_v21 = vadd.f32 %v433_v62, %v430_v34  ;;  %v541_v13 = vadd.f32 %v539_v5, %v536_v33  ;;  %v603_v15 = vmul.f32 %v601_v45, %v1171_v56  ;;  %v606_v40 = vmul.f32 %v604_v17, %v1173_v57  ;;  %s1780_s8 = sld [smem:[#allocation3 + $0x61]] }
  0x6d   :  { %v567_v16 = vadd.f32 %v565_v39, %v562_v52  ;;  %v611_v19 = vmul.f32 %v609_v29, %v1175_v58  ;;  %v614_v62 = vstv %s1589_s9  ;;  %v619_v10 = vstv %s1595_s10  ;;  %s1019_s9 = smov 125   ;;  %s819_s10 = sld [smem:[#allocation3 + $0x3]] }
  0x6e   :  { %v440_v24 = vadd.f32 %v438_v38, %v435_v21  ;;  %v546_v4 = vadd.f32 %v544_v11, %v541_v13  ;;  %v608_v25 = vadd.f32 %v606_v40, %v603_v15  ;;  %v616_v38 = vmul.f32 %v614_v62, %v1108_v22 }
  0x6f   :  { %v572_v32 = vadd.f32 %v570_v3, %v567_v16  ;;  %v585_v5 = vmul.f32 %v583_v6, %v1956_v27  ;;  %v624_v34 = vstv %s1603_s11  ;;  %v559_v33 = vmul.f32 %v558_v54, %v1131_v35  ;;  %s826_s11 = sld [smem:[#allocation3 + $0xa]] }
  0x70   :  { %v445_v39 = vadd.f32 %v443_v61, %v440_v24  ;;  %v551_v14 = vadd.f32 %v549_v2, %v546_v4  ;;  %v613_v11 = vadd.f32 %v611_v19, %v608_v25  ;;  %v621_v21 = vmul.f32 %v619_v10, %v1187_v0 }
  0x71   :  { %v577_v61 = vadd.f32 %v575_v55, %v572_v32  ;;  %v590_v3 = vmul.f32 %v588_v53, %v1960_v8  ;;  %v564_v2 = vmul.f32 %v563_v60, %v1133_v36  ;;  %v629_v52 = vstv %s1614_s12  ;;  %s833_s12 = sld [smem:[#allocation3 + $0x11]] }
  0x72   :  { %447 = vrot.lane.b32.xlu0 %v445_v39, %s1016_s1  ;;  %v556_v54 = vadd.f32 %v554_v12, %v551_v14  ;;  %v618_v13 = vadd.f32 %v616_v38, %v613_v11  ;;  %v626_v15 = vmul.f32 %v624_v34, %v1201_v7  ;;  %v634_v40 = vstv %s1619_s13  ;;  %s1813_s13 = sld [smem:[#allocation3 + $0x18]] }
  0x73   :  { %v582_v24 = vadd.f32 %v580_v1, %v577_v61  ;;  %v569_v55 = vmul.f32 %v568_v48, %v1135_v37  ;;  %v574_v16 = vmul.f32 %v573_v28, %v1093_v18  ;;  %v579_v60 = vmul.f32 %v578_v31, %v1966_v41 }
  0x74   :  { %v561_v12 = vadd.f32 %v559_v33, %v556_v54  ;;  %v584_v19 = vmul.f32 %v583_v6, %v1236_v26  ;;  %v623_v4 = vadd.f32 %v621_v21, %v618_v13  ;;  %v631_v1 = vmul.f32 %v629_v52, %v1205_v9 }
  0x75   :  { %v587_v48 = vadd.f32 %v585_v5, %v582_v24  ;;  %v636_v28 = vmul.f32 %v634_v40, %v1147_v42  ;;  %v639_v25 = vstv %s1626_s14  ;;  %v644_v38 = vstv %s1628_s15  ;;  %s1817_s14 = sld [smem:[#allocation3 + $0x1f]]  ;;  %s1820_s15 = sld [smem:[#allocation3 + $0x26]] }
  0x76   :  { %v566_v31 = vadd.f32 %v564_v2, %v561_v12  ;;  %v628_v6 = vadd.f32 %v626_v15, %v623_v4  ;;  %v649_v39 = vstv %s1632_s16  ;;  %v654_v32 = vstv %s1634_s17  ;;  %s1823_s16 = sld [smem:[#allocation3 + $0x2d]]  ;;  %s1829_s17 = sld [smem:[#allocation3 + $0x34]] }
  0x77   :  { %v592_v14 = vadd.f32 %v590_v3, %v587_v48  ;;  %v602_v5 = vmul.f32 %v601_v45, %v1157_v49  ;;  %v605_v33 = vmul.f32 %v604_v17, %v1159_v50  ;;  %v610_v11 = vmul.f32 %v609_v29, %v1161_v51 }
  0x78   :  { %v571_v21 = vadd.f32 %v569_v55, %v566_v31  ;;  %v633_v61 = vadd.f32 %v631_v1, %v628_v6  ;;  %v641_v2 = vmul.f32 %v639_v25, %v1149_v43  ;;  %v659_v3 = vstv %s1641_s18  ;;  %s1833_s18 = sld [smem:[#allocation3 + $0x3b]] }
  0x79   :  { %595 = vrot.lane.b32.xlu1 %v592_v14, %s1017_s25  ;;  %v589_v45 = vmul.f32 %v588_v53, %v1271_v47  ;;  %v646_v17 = vmul.f32 %v644_v38, %v1151_v44  ;;  %v607_v29 = vadd.f32 %v605_v33, %v602_v5  ;;  %v615_v54 = vmul.f32 %v614_v62, %v1959_v63 }
  0x7a   :  { %v576_v13 = vadd.f32 %v574_v16, %v571_v21  ;;  %v638_v15 = vadd.f32 %v636_v28, %v633_v61  ;;  %v651_v24 = vmul.f32 %v649_v39, %v1097_v20  ;;  %v656_v53 = vmul.f32 %v654_v32, %v1234_v23 }
  0x7b   :  { %v661_v55 = vmul.f32 %v659_v3, %v1956_v27  ;;  %v664_v12 = vstv %s1667_s19  ;;  %v612_v4 = vadd.f32 %v610_v11, %v607_v29  ;;  %v620_v62 = vmul.f32 %v619_v10, %v1962_v46  ;;  %s1837_s19 = sld [smem:[#allocation3 + $0x42]] }
  0x7c   :  { %v581_v16 = vadd.f32 %v579_v60, %v576_v13  ;;  %v643_v1 = vadd.f32 %v641_v2, %v638_v15  ;;  %v625_v48 = vmul.f32 %v624_v34, %v1963_v30  ;;  %v677_v28 = vstv %s1673_s20  ;;  %s1841_s20 = sld [smem:[#allocation3 + $0x49]] }
  0x7d   :  { %v617_v31 = vadd.f32 %v615_v54, %v612_v4  ;;  %v679_v6 = vmul.f32 %v677_v28, %v1171_v56  ;;  %v680_v14 = vstv %s1680_s21  ;;  %v685_v5 = vstv %s1682_s22  ;;  %s1844_s21 = sld [smem:[#allocation3 + $0x50]]  ;;  %s1849_s22 = sld [smem:[#allocation3 + $0x57]] }
  0x7e   :  { %v586_v10 = vadd.f32 %v584_v19, %v581_v16  ;;  %v648_v33 = vadd.f32 %v646_v17, %v643_v1  ;;  %v682_v60 = vmul.f32 %v680_v14, %v1173_v57  ;;  %v687_v11 = vmul.f32 %v685_v5, %v1175_v58 }
  0x7f   :  { %v622_v21 = vadd.f32 %v620_v62, %v617_v31  ;;  %v630_v34 = vmul.f32 %v629_v52, %v1964_v59  ;;  %v690_v61 = vstv %s1689_s23  ;;  %v695_v2 = vstv %s1691_s24  ;;  %s1852_s23 = sld [smem:[#allocation3 + $0x5e]] }
  0x80   :  { %v591_v29 = vadd.f32 %v589_v45, %v586_v10  ;;  %v653_v54 = vadd.f32 %v651_v24, %v648_v33  ;;  %v684_v19 = vadd.f32 %v682_v60, %v679_v6  ;;  %v692_v17 = vmul.f32 %v690_v61, %v1108_v22 }
  0x81   :  { %v627_v13 = vadd.f32 %v625_v48, %v622_v21  ;;  %v635_v15 = vmul.f32 %v634_v40, %v1131_v35  ;;  %v700_v4 = vstv %s1705_s26  ;;  %v666_v45 = vmul.f32 %v664_v12, %v1960_v8 }
  0x82   :  { %593 = vrot.lane.b32.xlu0 %v591_v29, %s1017_s25  ;;  %v658_v52 = vadd.f32 %v656_v53, %v653_v54  ;;  %v689_v62 = vadd.f32 %v687_v11, %v684_v19  ;;  %v697_v24 = vmul.f32 %v695_v2, %v1187_v0  ;;  %v640_v16 = vmul.f32 %v639_v25, %v1133_v36 }
  0x83   :  { %v632_v22 = vadd.f32 %v630_v34, %v627_v13  ;;  %v705_v40 = vstv %s1720_s27  ;;  %v702_v31 = vmul.f32 %v700_v4, %v1201_v7  ;;  %v645_v6 = vmul.f32 %v644_v38, %v1135_v37 }
  0x84   :  { %v663_v1 = vadd.f32 %v661_v55, %v658_v52  ;;  %v694_v48 = vadd.f32 %v692_v17, %v689_v62  ;;  %v710_v10 = vstv %s1726_s28  ;;  %v707_v25 = vmul.f32 %v705_v40, %v1205_v9 }
  0x85   :  { %v637_v53 = vadd.f32 %v635_v15, %v632_v22  ;;  %v650_v55 = vmul.f32 %v649_v39, %v1093_v18  ;;  %v715_v21 = vstv %s1736_s30  ;;  %v678_v34 = vmul.f32 %v677_v28, %v1157_v49 }
  0x86   :  { %v668_v33 = vadd.f32 %v666_v45, %v663_v1  ;;  %v699_v60 = vadd.f32 %v697_v24, %v694_v48  ;;  %v712_v29 = vmul.f32 %v710_v10, %v1147_v42  ;;  %v681_v54 = vmul.f32 %v680_v14, %v1159_v50 }
  0x87   :  { %v642_v11 = vadd.f32 %v640_v16, %v637_v53  ;;  %v686_v19 = vmul.f32 %v685_v5, %v1161_v51  ;;  %v655_v18 = vmul.f32 %v654_v32, %v1966_v41  ;;  %v720_v39 = vstv %s1744_s3 }
  0x88   :  { %671 = vrot.lane.b32.xlu1 %v668_v33, %s1018_s7  ;;  %v704_v38 = vadd.f32 %v702_v31, %v699_v60  ;;  %v717_v13 = vmul.f32 %v715_v21, %v1149_v43  ;;  %v683_v15 = vadd.f32 %v681_v54, %v678_v34  ;;  %v691_v52 = vmul.f32 %v690_v61, %v1959_v63 }
  0x89   :  { %v647_v17 = vadd.f32 %v645_v6, %v642_v11  ;;  %v660_v51 = vmul.f32 %v659_v3, %v1236_v26  ;;  %v725_v14 = vstv %s1755_s4  ;;  %v722_v45 = vmul.f32 %v720_v39, %v1151_v44 }
  0x8a   :  { %v709_v28 = vadd.f32 %v707_v25, %v704_v38  ;;  %v688_v32 = vadd.f32 %v686_v19, %v683_v15  ;;  %v696_v62 = vmul.f32 %v695_v2, %v1962_v46  ;;  %v665_v43 = vmul.f32 %v664_v12, %v1271_v47 }
  0x8b   :  { %v652_v42 = vadd.f32 %v650_v55, %v647_v17  ;;  %v730_v22 = vstv %s1762_s5  ;;  %v727_v63 = vmul.f32 %v725_v14, %v1097_v20  ;;  %v701_v1 = vmul.f32 %v700_v4, %v1963_v30 }
  0x8c   :  { %v714_v5 = vadd.f32 %v712_v29, %v709_v28  ;;  %v693_v61 = vadd.f32 %v691_v52, %v688_v32  ;;  %v735_v48 = vstv %s1769_s6  ;;  %v732_v44 = vmul.f32 %v730_v22, %v1234_v23  ;;  %v1807_v29 = vld [vmem:[#allocation2 + $0x28] sm:$0xff]  ;;  %v931_v52 = vld [vmem:[#allocation2 + $0x10] sm:$0xff] }
  0x8d   :  { %v657_v24 = vadd.f32 %v655_v18, %v652_v42  ;;  %v706_v6 = vmul.f32 %v705_v40, %v1964_v59  ;;  %v740_v33 = vstv %s1780_s8  ;;  %v737_v12 = vmul.f32 %v735_v48, %v1956_v27  ;;  %v932_v32 = vld [vmem:[#allocation2 + $0x7] sm:$0xff] }
  0x8e   :  { %v719_v16 = vadd.f32 %v717_v13, %v714_v5  ;;  %v698_v53 = vadd.f32 %v696_v62, %v693_v61  ;;  %v711_v11 = vmul.f32 %v710_v10, %v1131_v35  ;;  %v742_v30 = vmul.f32 %v740_v33, %v1960_v8 }
  0x8f   :  { %v662_v3 = vadd.f32 %v660_v51, %v657_v24  ;;  %v716_v55 = vmul.f32 %v715_v21, %v1133_v36  ;;  %v721_v59 = vmul.f32 %v720_v39, %v1135_v37  ;;  %v726_v27 = vmul.f32 %v1807_v29, %v725_v14 }
  0x90   :  { %v724_v31 = vadd.f32 %v722_v45, %v719_v16  ;;  %v703_v25 = vadd.f32 %v701_v1, %v698_v53  ;;  %v731_v10 = vmul.f32 %v730_v22, %v1966_v41  ;;  %v736_v8 = vmul.f32 %v735_v48, %v1236_v26  ;;  %v933_v16 = vld [vmem:[#allocation2 + $0x8] sm:$0xff] }
  0x91   :  { %v667_v2 = vadd.f32 %v665_v43, %v662_v3  ;;  %v741_v36 = vmul.f32 %v740_v33, %v1271_v47  ;;  %v455_v37 = vstv %s819_s10  ;;  %v458_v18 = vstv %s826_s11 }
  0x92   :  { %v729_v60 = vadd.f32 %v727_v63, %v724_v31  ;;  %v708_v4 = vadd.f32 %v706_v6, %v703_v25  ;;  %v457_v39 = vmul.f32 %v455_v37, %v1171_v56  ;;  %v460_v41 = vmul.f32 %v458_v18, %v1173_v57  ;;  %v934_v31 = vld [vmem:[#allocation2 + $0x2d] sm:$0xff] }
  0x93   :  { %669 = vrot.lane.b32.xlu0 %v667_v2, %s1018_s7  ;;  %v463_v26 = vstv %s833_s12  ;;  %v468_v13 = vstv %s1813_s13  ;;  %v473_v56 = vstv %s1817_s14  ;;  %v456_v57 = vmul.f32 %v455_v37, %v1157_v49  ;;  %v935_v6 = vld [vmem:[#allocation2 + $0xa] sm:$0xff] }
  0x94   :  { %v734_v20 = vadd.f32 %v732_v44, %v729_v60  ;;  %v713_v34 = vadd.f32 %v711_v11, %v708_v4  ;;  %v462_v47 = vadd.f32 %v460_v41, %v457_v39  ;;  %v465_v28 = vmul.f32 %v463_v26, %v1175_v58  ;;  %v936_v60 = vld [vmem:[#allocation2 + $0x2e] sm:$0xff]  ;;  %v941_v37 = vld [vmem:[#allocation2 + $0x26] sm:$0xff] }
  0x95   :  { %v470_v42 = vmul.f32 %v931_v52, %v468_v13  ;;  %v459_v51 = vmul.f32 %v458_v18, %v1159_v50  ;;  %v475_v5 = vmul.f32 %v473_v56, %v1187_v0  ;;  %v478_v58 = vstv %s1820_s15  ;;  %v942_v41 = vld [vmem:[#allocation2 + $0x31] sm:$0xff] }
  0x96   :  { %v739_v23 = vadd.f32 %v737_v12, %v734_v20  ;;  %v718_v38 = vadd.f32 %v716_v55, %v713_v34  ;;  %v467_v15 = vadd.f32 %v465_v28, %v462_v47  ;;  %v464_v62 = vmul.f32 %v932_v32, %v463_v26  ;;  %v937_v20 = vld [vmem:[#allocation2 + $0xb] sm:$0xff] }
  0x97   :  { %v461_v45 = vadd.f32 %v459_v51, %v456_v57  ;;  %v480_v43 = vmul.f32 %v478_v58, %v1201_v7  ;;  %v483_v22 = vstv %s1823_s16  ;;  %v469_v50 = vmul.f32 %v933_v16, %v468_v13  ;;  %v938_v55 = vld [vmem:[#allocation2 + $0x2f] sm:$0xff] }
  0x98   :  { %v744_v40 = vadd.f32 %v742_v30, %v739_v23  ;;  %v723_v35 = vadd.f32 %v721_v59, %v718_v38  ;;  %v472_v14 = vadd.f32 %v470_v42, %v467_v15  ;;  %v485_v0 = vmul.f32 %v483_v22, %v1205_v9  ;;  %v939_v38 = vld [vmem:[#allocation2 + $0x25] sm:$0xff] }
  0x99   :  { %v466_v49 = vadd.f32 %v464_v62, %v461_v45  ;;  %v488_v61 = vstv %s1829_s17  ;;  %v474_v3 = vmul.f32 %v473_v56, %v1962_v46  ;;  %v493_v44 = vstv %s1833_s18  ;;  %v943_v42 = vld [vmem:[#allocation2 + $0x27] sm:$0xff] }
  0x9a   :  { %747 = vrot.lane.b32.xlu1 %v744_v40, %s1019_s9  ;;  %v728_v54 = vadd.f32 %v726_v27, %v723_v35  ;;  %v477_v24 = vadd.f32 %v475_v5, %v472_v14  ;;  %v490_v7 = vmul.f32 %v934_v31, %v488_v61  ;;  %v479_v2 = vmul.f32 %v935_v6, %v478_v58  ;;  %v944_v5 = vld [vmem:[#allocation2 + $0x32] sm:$0xff]  ;;  %v947_v6 = vld [vmem:[#allocation2 + $0x2a] sm:$0xff] }
  0x9b   :  { %v471_v1 = vadd.f32 %v469_v50, %v466_v49  ;;  %v495_v9 = vmul.f32 %v936_v60, %v493_v44  ;;  %v42_v12 = vlaneseq  ;;  %v498_v25 = vstv %s1837_s19  ;;  %v945_v49 = vld [vmem:[#allocation2 + $0x33] sm:$0xff] }
  0x9c   :  { %v733_v19 = vadd.f32 %v731_v10, %v728_v54  ;;  %v482_v63 = vadd.f32 %v480_v43, %v477_v24  ;;  %v484_v46 = vmul.f32 %v937_v20, %v483_v22  ;;  %v500_v23 = vmul.f32 %v938_v55, %v498_v25  ;;  %v940_v10 = vld [vmem:[#allocation2 + $0x30] sm:$0xff] }
  0x9d   :  { %v476_v53 = vadd.f32 %v474_v3, %v471_v1  ;;  %v43_v34 = vand.u32 127, %v42_v12  ;;  %v503_v59 = vstv %s1841_s20  ;;  %v489_v27 = vmul.f32 %v939_v38, %v488_v61  ;;  %v946_v3 = vld [vmem:[#allocation2 + $0x29] sm:$0xff] }
  0x9e   :  { %v738_v21 = vadd.f32 %v736_v8, %v733_v19  ;;  %v487_v48 = vadd.f32 %v485_v0, %v482_v63  ;;  %v505_v54 = vmul.f32 %v940_v10, %v503_v59  ;;  %v508_v19 = vstv %s1844_s21 }
  0x9f   :  { %v481_v11 = vadd.f32 %v479_v2, %v476_v53  ;;  %v48_v8 = vand.u32 15, %v43_v34  ;;  %v494_v18 = vmul.f32 %v941_v37, %v493_v44  ;;  %v510_v26 = vmul.f32 %v942_v41, %v508_v19 }
  0xa0   :  { %v743_v17 = vadd.f32 %v741_v36, %v738_v21  ;;  %v492_v33 = vadd.f32 %v490_v7, %v487_v48  ;;  %v513_v28 = vstv %s1849_s22  ;;  %v499_v56 = vmul.f32 %v943_v42, %v498_v25 }
  0xa1   :  { %v486_v40 = vadd.f32 %v484_v46, %v481_v11  ;;  %v60_v47 = vadd.s32 4294967294, %v48_v8  ;;  %v56_v13 = vadd.s32 4294967293, %v48_v8  ;;  %v1856_v15 = vadd.s32 4294967295, %v48_v8  ;;  %v948_v46 = vld [vmem:[#allocation2 + $0x2b] sm:$0xff] }
  0xa2   :  { %745 = vrot.lane.b32.xlu0 %v743_v17, %s1019_s9  ;;  %v497_v4 = vadd.f32 %v495_v9, %v492_v33  ;;  %v515_v58 = vmul.f32 %v944_v5, %v513_v28  ;;  %v518_v45 = vstv %s1852_s23  ;;  %v504_v62 = vmul.f32 %v1807_v29, %v503_v59 }
  0xa3   :  { %v491_v17 = vadd.f32 %v489_v27, %v486_v40  ;;  %vm61_vm0 = vcmp.ge.s32.totalorder %v60_v47, 0  ;;  %vm57_vm1 = vcmp.ge.s32.totalorder %v56_v13, 0  ;;  %vm65_vm2 = vcmp.ge.s32.totalorder %v1856_v15, 0 }
  0xa4   :  { %v502_v35 = vadd.f32 %v500_v23, %v497_v4  ;;  %v520_v16 = vmul.f32 %v945_v49, %v518_v45  ;;  %v1865_v0 = vadd.s32 1, %v48_v8  ;;  %v509_v48 = vmul.f32 %v946_v3, %v508_v19 }
  0xa5   :  { %v496_v52 = vadd.f32 %v494_v18, %v491_v17  ;;  %v72_v29 = vadd.s32 2, %v48_v8  ;;  %v514_v2 = vmul.f32 %v947_v6, %v513_v28  ;;  %v76_v9 = vadd.s32 3, %v48_v8 }
  0xa6   :  { %v507_v39 = vadd.f32 %v505_v54, %v502_v35  ;;  %vm70_vm3 = vcmp.lt.s32.totalorder %v1865_v0, 16  ;;  %v519_v4 = vmul.f32 %v948_v46, %v518_v45 }
  0xa7   :  { %v501_v32 = vadd.f32 %v499_v56, %v496_v52  ;;  %vm74_vm4 = vcmp.lt.s32.totalorder %v72_v29, 16  ;;  %vm78_vm5 = vcmp.lt.s32.totalorder %v76_v9, 16 }
  0xa8   :  { %v512_v14 = vadd.f32 %v510_v26, %v507_v39 }
  0xa9   :  { %v506_v1 = vadd.f32 %v504_v62, %v501_v32 }
  0xaa   :  { %v517_v22 = vadd.f32 %v515_v58, %v512_v14 }
  0xab   :  { %v511_v53 = vadd.f32 %v509_v48, %v506_v1 }
  0xac   :  { %v522_v7 = vadd.f32 %v520_v16, %v517_v22 }
  0xad   :  { %v516_v20 = vadd.f32 %v514_v2, %v511_v53 }
  0xaf   :  { %v521_v27 = vadd.f32 %v519_v4, %v516_v20 }
  0xc1   :  { %v1847_v30 = vpop.permute.xlu1 %371 }
  0xc2   :  { %v375_v12 = vsel %vm61_vm0, %v1847_v30, 0.0 }
  0xc6   :  { %v298_v36 = vpop.permute.xlu0 %297 }
  0xc7   :  { %v301_v25 = vsel %vm57_vm1, %v298_v36, 0.0 }
  0xc8   :  { %v377_v34 = vadd.f32 %v375_v12, %v301_v25 }
  0xcf   :  { %v374_v21 = vpop.permute.xlu1 %373 }
  0xd0   :  { %v376_v24 = vsel %vm61_vm0, %v374_v21, 0.0  ;;  %v1967_v21 = vmov 0.0  }
  0xd1   :  { %v300_v57 = vpop.permute.xlu0 %299 }
  0xd2   :  { %v302_v43 = vsel %vm57_vm1, %v300_v57, 0.0 }
  0xd3   :  { %v378_v63 = vadd.f32 %v376_v24, %v302_v43 }
  0xd4   :  { %v450_v51 = vpop.permute.xlu1 %449 }
  0xd5   :  { %v452_v50 = vsel %vm65_vm2, %v450_v51, 0.0 }
  0xd6   :  { %v454_v31 = vadd.f32 %v452_v50, %v378_v63 }
  0xd8   :  { %v524_v33 = vadd.f32 %v522_v7, %v454_v31 }
  0xe4   :  { %v448_v44 = vpop.permute.xlu0 %447 }
  0xe5   :  { %v451_v55 = vsel %vm65_vm2, %v448_v44, 0.0 }
  0xe6   :  { %v453_v38 = vadd.f32 %v451_v55, %v377_v34 }
  0xe8   :  { %v523_v8 = vadd.f32 %v521_v27, %v453_v38 }
  0xeb   :  { %v596_v61 = vpop.permute.xlu1 %595 }
  0xec   :  { %v598_v11 = vsel %vm70_vm3, %v596_v61, 0.0 }
  0xed   :  { %v600_v59 = vadd.f32 %v598_v11, %v524_v33 }
  0xf4   :  { %v594_v40 = vpop.permute.xlu0 %593 }
  0xf5   :  { %v597_v36 = vsel %vm70_vm3, %v594_v40, 0.0 }
  0xf6   :  { %v599_v18 = vadd.f32 %v597_v36, %v523_v8 }
  0xfa   :  { %v672_v60 = vpop.permute.xlu1 %671 }
  0xfb   :  { %v674_v23 = vsel %vm74_vm4, %v672_v60, 0.0 }
  0xfc   :  { %v676_v30 = vadd.f32 %v674_v23, %v600_v59 }
 0x105   :  { %v670_v19 = vpop.permute.xlu0 %669 }
 0x106   :  { %v673_v37 = vsel %vm74_vm4, %v670_v19, 0.0 }
 0x107   :  { %v675_v39 = vadd.f32 %v673_v37, %v599_v18 }
 0x10c   :  { %v748_v35 = vpop.permute.xlu1 %747 }
 0x10d   :  { %v750_v10 = vsel %vm78_vm5, %v748_v35, 0.0 }
 0x10e   :  { %v752_v54 = vadd.f32 %v750_v10, %v676_v30 }
 0x110   :  { %754 = vst [vmem:[#allocation8 + $0x8] sm:$0xff] %v752_v54  ;;  %vm756_vm6 = vcmp.ge.f32.partialorder %v752_v54, 0.0 }
 0x111   :  { %v915_v17 = vsel %vm756_vm6, 1.0, %v1967_v21 }
 0x112   :  { %763 = vst [vmem:[#allocation8 + $0x18] sm:$0xff] %v915_v17  ;;  %765 = vst [vmem:[#allocation2 + $0x10] sm:$0xff] %v915_v17 }
 0x114   :  { %v746_v41 = vpop.permute.xlu0 %745 }
 0x115   :  { %v749_v26 = vsel %vm78_vm5, %v746_v41, 0.0 }
 0x116   :  { %v751_v47 = vadd.f32 %v749_v26, %v675_v39 }
 0x118   :  { %753 = vst [vmem:[#allocation8] sm:$0xff] %v751_v47  ;;  %vm755_vm7 = vcmp.ge.f32.partialorder %v751_v47, 0.0 }
 0x119   :  { %v914_v28 = vsel %vm755_vm7, 1.0, %v1967_v21  ;;  %v771_v57 = vld [vmem:[#allocation2 + $0x11] sm:$0xff] }
 0x11a   :  { %762 = vst [vmem:[#allocation8 + $0x10] sm:$0xff] %v914_v28  ;;  %764 = vst [vmem:[#allocation2 + $0x8] sm:$0xff] %v914_v28 }
 0x121   :  { %v767_v13 = vld [vmem:[#allocation2 + $0xf] sm:$0xff]  ;;  %v766_v52 = vld [vmem:[#allocation2 + $0x7] sm:$0xff] }
 0x122   :  { %v769_v42 = vadd.f32 %v915_v17, %v767_v13  ;;  %v768_v56 = vadd.f32 %v914_v28, %v766_v52  ;;  %v770_v51 = vld [vmem:[#allocation2 + $0x9] sm:$0xff] }
 0x124   :  { %v773_v14 = vadd.f32 %v771_v57, %v769_v42  ;;  %v772_v5 = vadd.f32 %v770_v51, %v768_v56 }
 0x126   :  { %776 = vrot.lane.b32.xlu1 %v773_v14, %s1016_s1  ;;  %774 = vrot.lane.b32.xlu0 %v772_v5, %s1016_s1  ;;  %s1020_s1 = smov [#allocation8]  }
 0x127   :  { %s804_s24 = sshll.u32 %s1020_s1, 4  ;;  %s805_s24 = int_to_ptr.vmem [resolvable:$true] %s804_s24 }
 0x128   :  { %p986_p12 = scmp.lt.s32.totalorder %s805_s24, %s805_s24 }
 0x12a   :  { %784 = vrot.lane.b32.xlu1 %v773_v14, %s1017_s25  ;;  %782 = vrot.lane.b32.xlu0 %v772_v5, %s1017_s25  ;;  %s981_s25 = scalar_lea.vmem %s805_s24, 768 }
 0x12b   :  { %p982_p11 = scmp.ne.s32.totalorder %s805_s24, %s981_s25  ;;  %p987_p13 = scmp.lt.s32.totalorder %s981_s25, %s981_s25 }
 0x12d   :  { %p988_p0 = por %p987_p13, %p986_p12 }
 0x12f   :  { %p989_p1 = pnand %p988_p0, %p982_p11 }
 0x198   :  { %v777_v58 = vpop.permute.xlu1 %776  ;;  %v775_v45 = vpop.permute.xlu0 %774 }
 0x199   :  { %v779_v32 = vsel %vm65_vm2, %v777_v58, 0.0  ;;  %v778_v62 = vsel %vm65_vm2, %v775_v45, 0.0 }
 0x19a   :  { %v781_v24 = vadd.f32 %v779_v32, %v773_v14  ;;  %v780_v43 = vadd.f32 %v778_v62, %v772_v5 }
 0x19c   :  { %v785_v22 = vpop.permute.xlu1 %784  ;;  %v783_v49 = vpop.permute.xlu0 %782 }
 0x19d   :  { %v787_v16 = vsel %vm70_vm3, %v785_v22, 0.0  ;;  %v786_v50 = vsel %vm70_vm3, %v783_v49, 0.0 }
 0x19e   :  { %v789_v63 = vadd.f32 %v787_v16, %v781_v24  ;;  %v788_v61 = vadd.f32 %v786_v50, %v780_v43 }
 0x1a0   :  { %vm791_vm8 = vcmp.gt.f32.partialorder %v789_v63, 0.5  ;;  %vm790_vm9 = vcmp.gt.f32.partialorder %v788_v61, 0.5 }
 0x1a1   :  { %v917_v15 = vsel %vm791_vm8, 1.0, %v1967_v21  ;;  %v916_v1 = vsel %vm790_vm9, 1.0, %v1967_v21 }
 0x1a2   :  { %798 = vst [vmem:[#allocation8 + $0x28] sm:$0xff] %v917_v15  ;;  %797 = vst [vmem:[#allocation8 + $0x20] sm:$0xff] %v916_v1 }
 0x1a3   :  { %992 = shalt.err (!%p989_p1)
}
 0x1a4   :  { %s993_s28 = scalar_lea.hbm %s1914_s2, 768 }
 0x1a5   :  { %p994_p2 = scmp.ne.s32.totalorder %s1914_s2, %s993_s28  ;;  %p997_p3 = scmp.lt.u32.totalorder %s993_s28, %s1914_s2 }
 0x1a7   :  { %p999_p4 = pnand %p997_p3, %p994_p2 }
 0x1a9   :  { %1002 = shalt.err (!%p999_p4)
}
 0x1aa   :  { %810 = dma.vmem_to_hbm [thread:$0]  %s805_s24, 768, %s1914_s2, [#allocation5], %s1011_s0, %s1011_s0, %s1012_s29  }
 0x1ab   :  { %1007 = dma.done.wait [#allocation5], 768  }
 0x1ac   :  { %1008 = vsyncadd [#allocation5], 4294966528 }
 0x1ad   :  { %814 = vsyncpa [#allocation4], 1 }
 0x1ae   :  { %815 = vsyncpa [#allocation5], 1 }
 0x1af   :  { %816 = vsyncpa [#allocation6], 1 }

</bundles_post_ra>
